<compile_context>
chip_gen: v7x
topology: tpu7x:2x2x1
jax: 0.10.0
libtpu: 0.0.40
codegen_flags: <defaults>
</compile_context>

<pallas_src>
import functools
import math

import jax
import jax.numpy as jnp
from jax import lax
from jax.experimental import pallas as pl
from jax.experimental.pallas import tpu as pltpu

MAX_VAL = 0.734375          # self.max
MIN_VAL = float("nan")      # self.min ('nan' in the PyTorch module)

KH = KW = 3
CIN = 3
COUT = 3


def _conv3x3_clamp_kernel(x_ref, w_ref, b_ref, o_ref, *, h, w, min_val, max_val):
    """Direct 3x3 conv (stride 1, pad 1) + clamp on flattened channel planes.

    x_ref : (N*CIN,  H*W)          f32, VMEM  (one input channel plane per row)
    w_ref : (COUT*CIN*KH*KW,)      f32, SMEM  (row-major (co, ci, kh, kw))
    b_ref : (COUT,)                f32, SMEM
    o_ref : (N*COUT, H*W)          f32, VMEM  (one output channel plane per row)
    """
    hw = h * w
    n = x_ref.shape[0] // CIN

    # Lane-aligned halo: concat at 128-multiples is free, and every tap becomes
    # a plain lane-offset slice of a zero-padded plane (height boundary handled
    # by the zeros; only the width boundary still needs a mask).
    padl = ((w + 1 + 127) // 128) * 128

    x = x_ref[...]                                            # (N*CIN, HW)
    zpad = jnp.zeros((n * CIN, padl), jnp.float32)
    xp = jnp.concatenate([zpad, x, zpad], axis=1)             # aligned concat

    pos = lax.broadcasted_iota(jnp.int32, (1, hw), 1)
    col = (pos & (w - 1)) if (w & (w - 1)) == 0 else (pos % w)
    col_ok = {-1: col >= 1, 0: None, 1: col < (w - 1)}

    # One lane-dense (1, HW) accumulator per (batch, cout), seeded with bias.
    accs = [[jnp.full((1, hw), b_ref[co], jnp.float32) for co in range(COUT)]
            for _ in range(n)]

    # 9 taps; each tap (all input planes at once) feeds every (batch, ci, co)
    # scalar-broadcast FMA that uses it.  Pure VPU/XLU work, no MXU.
    for kh in range(KH):
        for kw in range(KW):
            dh, dw = kh - 1, kw - 1
            start = padl + dh * w + dw
            tap = xp[:, start:start + hw]                     # (N*CIN, HW)
            if dw != 0:
                tap = jnp.where(col_ok[dw], tap, 0.0)
            for bi in range(n):
                for ci in range(CIN):
                    t_row = tap[bi * CIN + ci:bi * CIN + ci + 1, :]   # (1, HW)
                    for co in range(COUT):
                        w_s = w_ref[((co * CIN + ci) * KH + kh) * KW + kw]
                        accs[bi][co] = accs[bi][co] + w_s * t_row

    out = jnp.concatenate(
        [accs[bi][co] for bi in range(n) for co in range(COUT)], axis=0)
    out = jnp.maximum(out, min_val)    # clamp_min (NaN bound propagates)
    out = jnp.minimum(out, max_val)    # clamp_max
    o_ref[...] = out.astype(o_ref.dtype)


def _conv_clamp(x_nchw, weight, bias, min_val, max_val):
    n, c, h, w = x_nchw.shape
    assert c == CIN
    hw = h * w

    # Free, contiguous reshapes only — no transpose, no pad, no extra HBM pass.
    x2d = x_nchw.reshape(n * CIN, hw)
    w_flat = weight.reshape(COUT * CIN * KH * KW)
    b_flat = bias.reshape(COUT)

    kernel = functools.partial(_conv3x3_clamp_kernel, h=h, w=w,
                               min_val=min_val, max_val=max_val)

    # Single invocation (no grid): the whole problem (~6 KB) fits in VMEM and
    # per-grid-step overhead would otherwise dominate.
    # TODO(synk): for large H*W / batch, reintroduce a "parallel" grid axis over
    # batch or row tiles (with a 2-row halo) so v7x's two TensorCores split the
    # work and its 64 MiB VMEM budget is respected.
    out2d = pl.pallas_call(
        kernel,
        out_shape=jax.ShapeDtypeStruct((n * COUT, hw), x_nchw.dtype),
        in_specs=[
            pl.BlockSpec(memory_space=pltpu.MemorySpace.VMEM),   # x planes
            pl.BlockSpec(memory_space=pltpu.MemorySpace.SMEM),   # weights
            pl.BlockSpec(memory_space=pltpu.MemorySpace.SMEM),   # bias
        ],
        out_specs=pl.BlockSpec(memory_space=pltpu.MemorySpace.VMEM),
    )(x2d, w_flat, b_flat)

    return out2d.reshape(n, COUT, h, w)


@jax.jit
def conv_clamp(x_nchw, weight, bias):
    """x_nchw: (N, 3, H, W) f32; weight: (3, 3, 3, 3); bias: (3,)."""
    return _conv_clamp(x_nchw, weight, bias, MIN_VAL, MAX_VAL)


def init_params(key):
    # Deterministic init mimicking torch.nn.Conv2d default:
    # uniform(-k, k) with k = 1/sqrt(fan_in), fan_in = Cin*KH*KW = 27.
    kw_key, kb_key = jax.random.split(key)
    fan_in = CIN * KH * KW
    bound = 1.0 / math.sqrt(fan_in)
    weight = jax.random.uniform(kw_key, (COUT, CIN, KH, KW),
                                minval=-bound, maxval=bound, dtype=jnp.float32)
    bias = jax.random.uniform(kb_key, (COUT,),
                              minval=-bound, maxval=bound, dtype=jnp.float32)
    return weight, bias


if __name__ == "__main__":
    key = jax.random.PRNGKey(0)
    k_x, k_p = jax.random.split(key)

    # Small shapes consistent with the module: batch=2, channels=3, spatial=16.
    x = jax.random.normal(k_x, (2, 3, 16, 16), dtype=jnp.float32)
    weight, bias = init_params(k_p)

    out = conv_clamp(x, weight, bias)
    out = jax.block_until_ready(out)

    assert out.shape == (2, 3, 16, 16)
    assert out.dtype == jnp.float32
    print("KERNEL_OK")
</pallas_src>

<mosaic_0001>
module attributes {stable_mosaic.version = 11 : i64} {
  func.func @_conv3x3_clamp_kernel(%arg0: memref<6x256xf32, #tpu.memory_space<vmem>>, %arg1: memref<81xf32, #tpu.memory_space<smem>>, %arg2: memref<3xf32, #tpu.memory_space<smem>>, %arg3: memref<6x256xf32, #tpu.memory_space<vmem>>) attributes {dimension_semantics = [], scalar_prefetch = 0 : i64, scratch_operands = 0 : i64, tpu.core_type = #tpu.core_type<tc>} {
    %c0 = arith.constant 0 : index
    %c0_0 = arith.constant 0 : index
    %0 = vector.load %arg0[%c0, %c0_0] : memref<6x256xf32, #tpu.memory_space<vmem>>, vector<6x256xf32>
    %cst = arith.constant 0.000000e+00 : f32
    %1 = vector.broadcast %cst : f32 to vector<6x128xf32>
    %2 = tpu.concatenate %1, %0, %1 in 1 : vector<6x128xf32>, vector<6x256xf32>, vector<6x128xf32> -> vector<6x512xf32>
    %3 = tpu.iota {dimensions = array<i32: 1>} : vector<1x256xi32>
    %c15_i32 = arith.constant 15 : i32
    %4 = vector.broadcast %c15_i32 : i32 to vector<1x256xi32>
    %5 = arith.andi %3, %4 : vector<1x256xi32>
    %c1_i32 = arith.constant 1 : i32
    %6 = vector.broadcast %c1_i32 : i32 to vector<1x256xi32>
    %7 = arith.cmpi sge, %5, %6 : vector<1x256xi32>
    %c15_i32_1 = arith.constant 15 : i32
    %8 = vector.broadcast %c15_i32_1 : i32 to vector<1x256xi32>
    %9 = arith.cmpi slt, %5, %8 : vector<1x256xi32>
    %c0_2 = arith.constant 0 : index
    %10 = memref.load %arg2[%c0_2] : memref<3xf32, #tpu.memory_space<smem>>
    %11 = vector.broadcast %10 : f32 to vector<1x256xf32>
    %c1 = arith.constant 1 : index
    %12 = memref.load %arg2[%c1] : memref<3xf32, #tpu.memory_space<smem>>
    %13 = vector.broadcast %12 : f32 to vector<1x256xf32>
    %c2 = arith.constant 2 : index
    %14 = memref.load %arg2[%c2] : memref<3xf32, #tpu.memory_space<smem>>
    %15 = vector.broadcast %14 : f32 to vector<1x256xf32>
    %c0_3 = arith.constant 0 : index
    %16 = memref.load %arg2[%c0_3] : memref<3xf32, #tpu.memory_space<smem>>
    %17 = vector.broadcast %16 : f32 to vector<1x256xf32>
    %c1_4 = arith.constant 1 : index
    %18 = memref.load %arg2[%c1_4] : memref<3xf32, #tpu.memory_space<smem>>
    %19 = vector.broadcast %18 : f32 to vector<1x256xf32>
    %c2_5 = arith.constant 2 : index
    %20 = memref.load %arg2[%c2_5] : memref<3xf32, #tpu.memory_space<smem>>
    %21 = vector.broadcast %20 : f32 to vector<1x256xf32>
    %22 = vector.extract_strided_slice %2 {offsets = [0, 111], sizes = [6, 256], strides = [1, 1]} : vector<6x512xf32> to vector<6x256xf32>
    %cst_6 = arith.constant 0.000000e+00 : f32
    %23 = vector.shape_cast %7 : vector<1x256xi1> to vector<1x256xi1>
    %24 = vector.broadcast %23 : vector<1x256xi1> to vector<6x256xi1>
    %25 = vector.broadcast %cst_6 : f32 to vector<6x256xf32>
    %26 = arith.select %24, %22, %25 : vector<6x256xi1>, vector<6x256xf32>
    %27 = vector.extract_strided_slice %26 {offsets = [0, 0], sizes = [1, 256], strides = [1, 1]} : vector<6x256xf32> to vector<1x256xf32>
    %c0_7 = arith.constant 0 : index
    %28 = memref.load %arg1[%c0_7] : memref<81xf32, #tpu.memory_space<smem>>
    %29 = vector.broadcast %28 : f32 to vector<1x256xf32>
    %30 = arith.mulf %29, %27 : vector<1x256xf32>
    %31 = arith.addf %11, %30 : vector<1x256xf32>
    %c27 = arith.constant 27 : index
    %32 = memref.load %arg1[%c27] : memref<81xf32, #tpu.memory_space<smem>>
    %33 = vector.broadcast %32 : f32 to vector<1x256xf32>
    %34 = arith.mulf %33, %27 : vector<1x256xf32>
    %35 = arith.addf %13, %34 : vector<1x256xf32>
    %c54 = arith.constant 54 : index
    %36 = memref.load %arg1[%c54] : memref<81xf32, #tpu.memory_space<smem>>
    %37 = vector.broadcast %36 : f32 to vector<1x256xf32>
    %38 = arith.mulf %37, %27 : vector<1x256xf32>
    %39 = arith.addf %15, %38 : vector<1x256xf32>
    %40 = vector.extract_strided_slice %26 {offsets = [1, 0], sizes = [1, 256], strides = [1, 1]} : vector<6x256xf32> to vector<1x256xf32>
    %c9 = arith.constant 9 : index
    %41 = memref.load %arg1[%c9] : memref<81xf32, #tpu.memory_space<smem>>
    %42 = vector.broadcast %41 : f32 to vector<1x256xf32>
    %43 = arith.mulf %42, %40 : vector<1x256xf32>
    %44 = arith.addf %31, %43 : vector<1x256xf32>
    %c36 = arith.constant 36 : index
    %45 = memref.load %arg1[%c36] : memref<81xf32, #tpu.memory_space<smem>>
    %46 = vector.broadcast %45 : f32 to vector<1x256xf32>
    %47 = arith.mulf %46, %40 : vector<1x256xf32>
    %48 = arith.addf %35, %47 : vector<1x256xf32>
    %c63 = arith.constant 63 : index
    %49 = memref.load %arg1[%c63] : memref<81xf32, #tpu.memory_space<smem>>
    %50 = vector.broadcast %49 : f32 to vector<1x256xf32>
    %51 = arith.mulf %50, %40 : vector<1x256xf32>
    %52 = arith.addf %39, %51 : vector<1x256xf32>
    %53 = vector.extract_strided_slice %26 {offsets = [2, 0], sizes = [1, 256], strides = [1, 1]} : vector<6x256xf32> to vector<1x256xf32>
    %c18 = arith.constant 18 : index
    %54 = memref.load %arg1[%c18] : memref<81xf32, #tpu.memory_space<smem>>
    %55 = vector.broadcast %54 : f32 to vector<1x256xf32>
    %56 = arith.mulf %55, %53 : vector<1x256xf32>
    %57 = arith.addf %44, %56 : vector<1x256xf32>
    %c45 = arith.constant 45 : index
    %58 = memref.load %arg1[%c45] : memref<81xf32, #tpu.memory_space<smem>>
    %59 = vector.broadcast %58 : f32 to vector<1x256xf32>
    %60 = arith.mulf %59, %53 : vector<1x256xf32>
    %61 = arith.addf %48, %60 : vector<1x256xf32>
    %c72 = arith.constant 72 : index
    %62 = memref.load %arg1[%c72] : memref<81xf32, #tpu.memory_space<smem>>
    %63 = vector.broadcast %62 : f32 to vector<1x256xf32>
    %64 = arith.mulf %63, %53 : vector<1x256xf32>
    %65 = arith.addf %52, %64 : vector<1x256xf32>
    %66 = vector.extract_strided_slice %26 {offsets = [3, 0], sizes = [1, 256], strides = [1, 1]} : vector<6x256xf32> to vector<1x256xf32>
    %c0_8 = arith.constant 0 : index
    %67 = memref.load %arg1[%c0_8] : memref<81xf32, #tpu.memory_space<smem>>
    %68 = vector.broadcast %67 : f32 to vector<1x256xf32>
    %69 = arith.mulf %68, %66 : vector<1x256xf32>
    %70 = arith.addf %17, %69 : vector<1x256xf32>
    %c27_9 = arith.constant 27 : index
    %71 = memref.load %arg1[%c27_9] : memref<81xf32, #tpu.memory_space<smem>>
    %72 = vector.broadcast %71 : f32 to vector<1x256xf32>
    %73 = arith.mulf %72, %66 : vector<1x256xf32>
    %74 = arith.addf %19, %73 : vector<1x256xf32>
    %c54_10 = arith.constant 54 : index
    %75 = memref.load %arg1[%c54_10] : memref<81xf32, #tpu.memory_space<smem>>
    %76 = vector.broadcast %75 : f32 to vector<1x256xf32>
    %77 = arith.mulf %76, %66 : vector<1x256xf32>
    %78 = arith.addf %21, %77 : vector<1x256xf32>
    %79 = vector.extract_strided_slice %26 {offsets = [4, 0], sizes = [1, 256], strides = [1, 1]} : vector<6x256xf32> to vector<1x256xf32>
    %c9_11 = arith.constant 9 : index
    %80 = memref.load %arg1[%c9_11] : memref<81xf32, #tpu.memory_space<smem>>
    %81 = vector.broadcast %80 : f32 to vector<1x256xf32>
    %82 = arith.mulf %81, %79 : vector<1x256xf32>
    %83 = arith.addf %70, %82 : vector<1x256xf32>
    %c36_12 = arith.constant 36 : index
    %84 = memref.load %arg1[%c36_12] : memref<81xf32, #tpu.memory_space<smem>>
    %85 = vector.broadcast %84 : f32 to vector<1x256xf32>
    %86 = arith.mulf %85, %79 : vector<1x256xf32>
    %87 = arith.addf %74, %86 : vector<1x256xf32>
    %c63_13 = arith.constant 63 : index
    %88 = memref.load %arg1[%c63_13] : memref<81xf32, #tpu.memory_space<smem>>
    %89 = vector.broadcast %88 : f32 to vector<1x256xf32>
    %90 = arith.mulf %89, %79 : vector<1x256xf32>
    %91 = arith.addf %78, %90 : vector<1x256xf32>
    %92 = vector.extract_strided_slice %26 {offsets = [5, 0], sizes = [1, 256], strides = [1, 1]} : vector<6x256xf32> to vector<1x256xf32>
    %c18_14 = arith.constant 18 : index
    %93 = memref.load %arg1[%c18_14] : memref<81xf32, #tpu.memory_space<smem>>
    %94 = vector.broadcast %93 : f32 to vector<1x256xf32>
    %95 = arith.mulf %94, %92 : vector<1x256xf32>
    %96 = arith.addf %83, %95 : vector<1x256xf32>
    %c45_15 = arith.constant 45 : index
    %97 = memref.load %arg1[%c45_15] : memref<81xf32, #tpu.memory_space<smem>>
    %98 = vector.broadcast %97 : f32 to vector<1x256xf32>
    %99 = arith.mulf %98, %92 : vector<1x256xf32>
    %100 = arith.addf %87, %99 : vector<1x256xf32>
    %c72_16 = arith.constant 72 : index
    %101 = memref.load %arg1[%c72_16] : memref<81xf32, #tpu.memory_space<smem>>
    %102 = vector.broadcast %101 : f32 to vector<1x256xf32>
    %103 = arith.mulf %102, %92 : vector<1x256xf32>
    %104 = arith.addf %91, %103 : vector<1x256xf32>
    %105 = vector.extract_strided_slice %2 {offsets = [0, 112], sizes = [6, 256], strides = [1, 1]} : vector<6x512xf32> to vector<6x256xf32>
    %106 = vector.extract_strided_slice %105 {offsets = [0, 0], sizes = [1, 256], strides = [1, 1]} : vector<6x256xf32> to vector<1x256xf32>
    %c1_17 = arith.constant 1 : index
    %107 = memref.load %arg1[%c1_17] : memref<81xf32, #tpu.memory_space<smem>>
    %108 = vector.broadcast %107 : f32 to vector<1x256xf32>
    %109 = arith.mulf %108, %106 : vector<1x256xf32>
    %110 = arith.addf %57, %109 : vector<1x256xf32>
    %c28 = arith.constant 28 : index
    %111 = memref.load %arg1[%c28] : memref<81xf32, #tpu.memory_space<smem>>
    %112 = vector.broadcast %111 : f32 to vector<1x256xf32>
    %113 = arith.mulf %112, %106 : vector<1x256xf32>
    %114 = arith.addf %61, %113 : vector<1x256xf32>
    %c55 = arith.constant 55 : index
    %115 = memref.load %arg1[%c55] : memref<81xf32, #tpu.memory_space<smem>>
    %116 = vector.broadcast %115 : f32 to vector<1x256xf32>
    %117 = arith.mulf %116, %106 : vector<1x256xf32>
    %118 = arith.addf %65, %117 : vector<1x256xf32>
    %119 = vector.extract_strided_slice %105 {offsets = [1, 0], sizes = [1, 256], strides = [1, 1]} : vector<6x256xf32> to vector<1x256xf32>
    %c10 = arith.constant 10 : index
    %120 = memref.load %arg1[%c10] : memref<81xf32, #tpu.memory_space<smem>>
    %121 = vector.broadcast %120 : f32 to vector<1x256xf32>
    %122 = arith.mulf %121, %119 : vector<1x256xf32>
    %123 = arith.addf %110, %122 : vector<1x256xf32>
    %c37 = arith.constant 37 : index
    %124 = memref.load %arg1[%c37] : memref<81xf32, #tpu.memory_space<smem>>
    %125 = vector.broadcast %124 : f32 to vector<1x256xf32>
    %126 = arith.mulf %125, %119 : vector<1x256xf32>
    %127 = arith.addf %114, %126 : vector<1x256xf32>
    %c64 = arith.constant 64 : index
    %128 = memref.load %arg1[%c64] : memref<81xf32, #tpu.memory_space<smem>>
    %129 = vector.broadcast %128 : f32 to vector<1x256xf32>
    %130 = arith.mulf %129, %119 : vector<1x256xf32>
    %131 = arith.addf %118, %130 : vector<1x256xf32>
    %132 = vector.extract_strided_slice %105 {offsets = [2, 0], sizes = [1, 256], strides = [1, 1]} : vector<6x256xf32> to vector<1x256xf32>
    %c19 = arith.constant 19 : index
    %133 = memref.load %arg1[%c19] : memref<81xf32, #tpu.memory_space<smem>>
    %134 = vector.broadcast %133 : f32 to vector<1x256xf32>
    %135 = arith.mulf %134, %132 : vector<1x256xf32>
    %136 = arith.addf %123, %135 : vector<1x256xf32>
    %c46 = arith.constant 46 : index
    %137 = memref.load %arg1[%c46] : memref<81xf32, #tpu.memory_space<smem>>
    %138 = vector.broadcast %137 : f32 to vector<1x256xf32>
    %139 = arith.mulf %138, %132 : vector<1x256xf32>
    %140 = arith.addf %127, %139 : vector<1x256xf32>
    %c73 = arith.constant 73 : index
    %141 = memref.load %arg1[%c73] : memref<81xf32, #tpu.memory_space<smem>>
    %142 = vector.broadcast %141 : f32 to vector<1x256xf32>
    %143 = arith.mulf %142, %132 : vector<1x256xf32>
    %144 = arith.addf %131, %143 : vector<1x256xf32>
    %145 = vector.extract_strided_slice %105 {offsets = [3, 0], sizes = [1, 256], strides = [1, 1]} : vector<6x256xf32> to vector<1x256xf32>
    %c1_18 = arith.constant 1 : index
    %146 = memref.load %arg1[%c1_18] : memref<81xf32, #tpu.memory_space<smem>>
    %147 = vector.broadcast %146 : f32 to vector<1x256xf32>
    %148 = arith.mulf %147, %145 : vector<1x256xf32>
    %149 = arith.addf %96, %148 : vector<1x256xf32>
    %c28_19 = arith.constant 28 : index
    %150 = memref.load %arg1[%c28_19] : memref<81xf32, #tpu.memory_space<smem>>
    %151 = vector.broadcast %150 : f32 to vector<1x256xf32>
    %152 = arith.mulf %151, %145 : vector<1x256xf32>
    %153 = arith.addf %100, %152 : vector<1x256xf32>
    %c55_20 = arith.constant 55 : index
    %154 = memref.load %arg1[%c55_20] : memref<81xf32, #tpu.memory_space<smem>>
    %155 = vector.broadcast %154 : f32 to vector<1x256xf32>
    %156 = arith.mulf %155, %145 : vector<1x256xf32>
    %157 = arith.addf %104, %156 : vector<1x256xf32>
    %158 = vector.extract_strided_slice %105 {offsets = [4, 0], sizes = [1, 256], strides = [1, 1]} : vector<6x256xf32> to vector<1x256xf32>
    %c10_21 = arith.constant 10 : index
    %159 = memref.load %arg1[%c10_21] : memref<81xf32, #tpu.memory_space<smem>>
    %160 = vector.broadcast %159 : f32 to vector<1x256xf32>
    %161 = arith.mulf %160, %158 : vector<1x256xf32>
    %162 = arith.addf %149, %161 : vector<1x256xf32>
    %c37_22 = arith.constant 37 : index
    %163 = memref.load %arg1[%c37_22] : memref<81xf32, #tpu.memory_space<smem>>
    %164 = vector.broadcast %163 : f32 to vector<1x256xf32>
    %165 = arith.mulf %164, %158 : vector<1x256xf32>
    %166 = arith.addf %153, %165 : vector<1x256xf32>
    %c64_23 = arith.constant 64 : index
    %167 = memref.load %arg1[%c64_23] : memref<81xf32, #tpu.memory_space<smem>>
    %168 = vector.broadcast %167 : f32 to vector<1x256xf32>
    %169 = arith.mulf %168, %158 : vector<1x256xf32>
    %170 = arith.addf %157, %169 : vector<1x256xf32>
    %171 = vector.extract_strided_slice %105 {offsets = [5, 0], sizes = [1, 256], strides = [1, 1]} : vector<6x256xf32> to vector<1x256xf32>
    %c19_24 = arith.constant 19 : index
    %172 = memref.load %arg1[%c19_24] : memref<81xf32, #tpu.memory_space<smem>>
    %173 = vector.broadcast %172 : f32 to vector<1x256xf32>
    %174 = arith.mulf %173, %171 : vector<1x256xf32>
    %175 = arith.addf %162, %174 : vector<1x256xf32>
    %c46_25 = arith.constant 46 : index
    %176 = memref.load %arg1[%c46_25] : memref<81xf32, #tpu.memory_space<smem>>
    %177 = vector.broadcast %176 : f32 to vector<1x256xf32>
    %178 = arith.mulf %177, %171 : vector<1x256xf32>
    %179 = arith.addf %166, %178 : vector<1x256xf32>
    %c73_26 = arith.constant 73 : index
    %180 = memref.load %arg1[%c73_26] : memref<81xf32, #tpu.memory_space<smem>>
    %181 = vector.broadcast %180 : f32 to vector<1x256xf32>
    %182 = arith.mulf %181, %171 : vector<1x256xf32>
    %183 = arith.addf %170, %182 : vector<1x256xf32>
    %184 = vector.extract_strided_slice %2 {offsets = [0, 113], sizes = [6, 256], strides = [1, 1]} : vector<6x512xf32> to vector<6x256xf32>
    %cst_27 = arith.constant 0.000000e+00 : f32
    %185 = vector.shape_cast %9 : vector<1x256xi1> to vector<1x256xi1>
    %186 = vector.broadcast %185 : vector<1x256xi1> to vector<6x256xi1>
    %187 = vector.broadcast %cst_27 : f32 to vector<6x256xf32>
    %188 = arith.select %186, %184, %187 : vector<6x256xi1>, vector<6x256xf32>
    %189 = vector.extract_strided_slice %188 {offsets = [0, 0], sizes = [1, 256], strides = [1, 1]} : vector<6x256xf32> to vector<1x256xf32>
    %c2_28 = arith.constant 2 : index
    %190 = memref.load %arg1[%c2_28] : memref<81xf32, #tpu.memory_space<smem>>
    %191 = vector.broadcast %190 : f32 to vector<1x256xf32>
    %192 = arith.mulf %191, %189 : vector<1x256xf32>
    %193 = arith.addf %136, %192 : vector<1x256xf32>
    %c29 = arith.constant 29 : index
    %194 = memref.load %arg1[%c29] : memref<81xf32, #tpu.memory_space<smem>>
    %195 = vector.broadcast %194 : f32 to vector<1x256xf32>
    %196 = arith.mulf %195, %189 : vector<1x256xf32>
    %197 = arith.addf %140, %196 : vector<1x256xf32>
    %c56 = arith.constant 56 : index
    %198 = memref.load %arg1[%c56] : memref<81xf32, #tpu.memory_space<smem>>
    %199 = vector.broadcast %198 : f32 to vector<1x256xf32>
    %200 = arith.mulf %199, %189 : vector<1x256xf32>
    %201 = arith.addf %144, %200 : vector<1x256xf32>
    %202 = vector.extract_strided_slice %188 {offsets = [1, 0], sizes = [1, 256], strides = [1, 1]} : vector<6x256xf32> to vector<1x256xf32>
    %c11 = arith.constant 11 : index
    %203 = memref.load %arg1[%c11] : memref<81xf32, #tpu.memory_space<smem>>
    %204 = vector.broadcast %203 : f32 to vector<1x256xf32>
    %205 = arith.mulf %204, %202 : vector<1x256xf32>
    %206 = arith.addf %193, %205 : vector<1x256xf32>
    %c38 = arith.constant 38 : index
    %207 = memref.load %arg1[%c38] : memref<81xf32, #tpu.memory_space<smem>>
    %208 = vector.broadcast %207 : f32 to vector<1x256xf32>
    %209 = arith.mulf %208, %202 : vector<1x256xf32>
    %210 = arith.addf %197, %209 : vector<1x256xf32>
    %c65 = arith.constant 65 : index
    %211 = memref.load %arg1[%c65] : memref<81xf32, #tpu.memory_space<smem>>
    %212 = vector.broadcast %211 : f32 to vector<1x256xf32>
    %213 = arith.mulf %212, %202 : vector<1x256xf32>
    %214 = arith.addf %201, %213 : vector<1x256xf32>
    %215 = vector.extract_strided_slice %188 {offsets = [2, 0], sizes = [1, 256], strides = [1, 1]} : vector<6x256xf32> to vector<1x256xf32>
    %c20 = arith.constant 20 : index
    %216 = memref.load %arg1[%c20] : memref<81xf32, #tpu.memory_space<smem>>
    %217 = vector.broadcast %216 : f32 to vector<1x256xf32>
    %218 = arith.mulf %217, %215 : vector<1x256xf32>
    %219 = arith.addf %206, %218 : vector<1x256xf32>
    %c47 = arith.constant 47 : index
    %220 = memref.load %arg1[%c47] : memref<81xf32, #tpu.memory_space<smem>>
    %221 = vector.broadcast %220 : f32 to vector<1x256xf32>
    %222 = arith.mulf %221, %215 : vector<1x256xf32>
    %223 = arith.addf %210, %222 : vector<1x256xf32>
    %c74 = arith.constant 74 : index
    %224 = memref.load %arg1[%c74] : memref<81xf32, #tpu.memory_space<smem>>
    %225 = vector.broadcast %224 : f32 to vector<1x256xf32>
    %226 = arith.mulf %225, %215 : vector<1x256xf32>
    %227 = arith.addf %214, %226 : vector<1x256xf32>
    %228 = vector.extract_strided_slice %188 {offsets = [3, 0], sizes = [1, 256], strides = [1, 1]} : vector<6x256xf32> to vector<1x256xf32>
    %c2_29 = arith.constant 2 : index
    %229 = memref.load %arg1[%c2_29] : memref<81xf32, #tpu.memory_space<smem>>
    %230 = vector.broadcast %229 : f32 to vector<1x256xf32>
    %231 = arith.mulf %230, %228 : vector<1x256xf32>
    %232 = arith.addf %175, %231 : vector<1x256xf32>
    %c29_30 = arith.constant 29 : index
    %233 = memref.load %arg1[%c29_30] : memref<81xf32, #tpu.memory_space<smem>>
    %234 = vector.broadcast %233 : f32 to vector<1x256xf32>
    %235 = arith.mulf %234, %228 : vector<1x256xf32>
    %236 = arith.addf %179, %235 : vector<1x256xf32>
    %c56_31 = arith.constant 56 : index
    %237 = memref.load %arg1[%c56_31] : memref<81xf32, #tpu.memory_space<smem>>
    %238 = vector.broadcast %237 : f32 to vector<1x256xf32>
    %239 = arith.mulf %238, %228 : vector<1x256xf32>
    %240 = arith.addf %183, %239 : vector<1x256xf32>
    %241 = vector.extract_strided_slice %188 {offsets = [4, 0], sizes = [1, 256], strides = [1, 1]} : vector<6x256xf32> to vector<1x256xf32>
    %c11_32 = arith.constant 11 : index
    %242 = memref.load %arg1[%c11_32] : memref<81xf32, #tpu.memory_space<smem>>
    %243 = vector.broadcast %242 : f32 to vector<1x256xf32>
    %244 = arith.mulf %243, %241 : vector<1x256xf32>
    %245 = arith.addf %232, %244 : vector<1x256xf32>
    %c38_33 = arith.constant 38 : index
    %246 = memref.load %arg1[%c38_33] : memref<81xf32, #tpu.memory_space<smem>>
    %247 = vector.broadcast %246 : f32 to vector<1x256xf32>
    %248 = arith.mulf %247, %241 : vector<1x256xf32>
    %249 = arith.addf %236, %248 : vector<1x256xf32>
    %c65_34 = arith.constant 65 : index
    %250 = memref.load %arg1[%c65_34] : memref<81xf32, #tpu.memory_space<smem>>
    %251 = vector.broadcast %250 : f32 to vector<1x256xf32>
    %252 = arith.mulf %251, %241 : vector<1x256xf32>
    %253 = arith.addf %240, %252 : vector<1x256xf32>
    %254 = vector.extract_strided_slice %188 {offsets = [5, 0], sizes = [1, 256], strides = [1, 1]} : vector<6x256xf32> to vector<1x256xf32>
    %c20_35 = arith.constant 20 : index
    %255 = memref.load %arg1[%c20_35] : memref<81xf32, #tpu.memory_space<smem>>
    %256 = vector.broadcast %255 : f32 to vector<1x256xf32>
    %257 = arith.mulf %256, %254 : vector<1x256xf32>
    %258 = arith.addf %245, %257 : vector<1x256xf32>
    %c47_36 = arith.constant 47 : index
    %259 = memref.load %arg1[%c47_36] : memref<81xf32, #tpu.memory_space<smem>>
    %260 = vector.broadcast %259 : f32 to vector<1x256xf32>
    %261 = arith.mulf %260, %254 : vector<1x256xf32>
    %262 = arith.addf %249, %261 : vector<1x256xf32>
    %c74_37 = arith.constant 74 : index
    %263 = memref.load %arg1[%c74_37] : memref<81xf32, #tpu.memory_space<smem>>
    %264 = vector.broadcast %263 : f32 to vector<1x256xf32>
    %265 = arith.mulf %264, %254 : vector<1x256xf32>
    %266 = arith.addf %253, %265 : vector<1x256xf32>
    %267 = vector.extract_strided_slice %2 {offsets = [0, 127], sizes = [6, 256], strides = [1, 1]} : vector<6x512xf32> to vector<6x256xf32>
    %cst_38 = arith.constant 0.000000e+00 : f32
    %268 = vector.shape_cast %7 : vector<1x256xi1> to vector<1x256xi1>
    %269 = vector.broadcast %268 : vector<1x256xi1> to vector<6x256xi1>
    %270 = vector.broadcast %cst_38 : f32 to vector<6x256xf32>
    %271 = arith.select %269, %267, %270 : vector<6x256xi1>, vector<6x256xf32>
    %272 = vector.extract_strided_slice %271 {offsets = [0, 0], sizes = [1, 256], strides = [1, 1]} : vector<6x256xf32> to vector<1x256xf32>
    %c3 = arith.constant 3 : index
    %273 = memref.load %arg1[%c3] : memref<81xf32, #tpu.memory_space<smem>>
    %274 = vector.broadcast %273 : f32 to vector<1x256xf32>
    %275 = arith.mulf %274, %272 : vector<1x256xf32>
    %276 = arith.addf %219, %275 : vector<1x256xf32>
    %c30 = arith.constant 30 : index
    %277 = memref.load %arg1[%c30] : memref<81xf32, #tpu.memory_space<smem>>
    %278 = vector.broadcast %277 : f32 to vector<1x256xf32>
    %279 = arith.mulf %278, %272 : vector<1x256xf32>
    %280 = arith.addf %223, %279 : vector<1x256xf32>
    %c57 = arith.constant 57 : index
    %281 = memref.load %arg1[%c57] : memref<81xf32, #tpu.memory_space<smem>>
    %282 = vector.broadcast %281 : f32 to vector<1x256xf32>
    %283 = arith.mulf %282, %272 : vector<1x256xf32>
    %284 = arith.addf %227, %283 : vector<1x256xf32>
    %285 = vector.extract_strided_slice %271 {offsets = [1, 0], sizes = [1, 256], strides = [1, 1]} : vector<6x256xf32> to vector<1x256xf32>
    %c12 = arith.constant 12 : index
    %286 = memref.load %arg1[%c12] : memref<81xf32, #tpu.memory_space<smem>>
    %287 = vector.broadcast %286 : f32 to vector<1x256xf32>
    %288 = arith.mulf %287, %285 : vector<1x256xf32>
    %289 = arith.addf %276, %288 : vector<1x256xf32>
    %c39 = arith.constant 39 : index
    %290 = memref.load %arg1[%c39] : memref<81xf32, #tpu.memory_space<smem>>
    %291 = vector.broadcast %290 : f32 to vector<1x256xf32>
    %292 = arith.mulf %291, %285 : vector<1x256xf32>
    %293 = arith.addf %280, %292 : vector<1x256xf32>
    %c66 = arith.constant 66 : index
    %294 = memref.load %arg1[%c66] : memref<81xf32, #tpu.memory_space<smem>>
    %295 = vector.broadcast %294 : f32 to vector<1x256xf32>
    %296 = arith.mulf %295, %285 : vector<1x256xf32>
    %297 = arith.addf %284, %296 : vector<1x256xf32>
    %298 = vector.extract_strided_slice %271 {offsets = [2, 0], sizes = [1, 256], strides = [1, 1]} : vector<6x256xf32> to vector<1x256xf32>
    %c21 = arith.constant 21 : index
    %299 = memref.load %arg1[%c21] : memref<81xf32, #tpu.memory_space<smem>>
    %300 = vector.broadcast %299 : f32 to vector<1x256xf32>
    %301 = arith.mulf %300, %298 : vector<1x256xf32>
    %302 = arith.addf %289, %301 : vector<1x256xf32>
    %c48 = arith.constant 48 : index
    %303 = memref.load %arg1[%c48] : memref<81xf32, #tpu.memory_space<smem>>
    %304 = vector.broadcast %303 : f32 to vector<1x256xf32>
    %305 = arith.mulf %304, %298 : vector<1x256xf32>
    %306 = arith.addf %293, %305 : vector<1x256xf32>
    %c75 = arith.constant 75 : index
    %307 = memref.load %arg1[%c75] : memref<81xf32, #tpu.memory_space<smem>>
    %308 = vector.broadcast %307 : f32 to vector<1x256xf32>
    %309 = arith.mulf %308, %298 : vector<1x256xf32>
    %310 = arith.addf %297, %309 : vector<1x256xf32>
    %311 = vector.extract_strided_slice %271 {offsets = [3, 0], sizes = [1, 256], strides = [1, 1]} : vector<6x256xf32> to vector<1x256xf32>
    %c3_39 = arith.constant 3 : index
    %312 = memref.load %arg1[%c3_39] : memref<81xf32, #tpu.memory_space<smem>>
    %313 = vector.broadcast %312 : f32 to vector<1x256xf32>
    %314 = arith.mulf %313, %311 : vector<1x256xf32>
    %315 = arith.addf %258, %314 : vector<1x256xf32>
    %c30_40 = arith.constant 30 : index
    %316 = memref.load %arg1[%c30_40] : memref<81xf32, #tpu.memory_space<smem>>
    %317 = vector.broadcast %316 : f32 to vector<1x256xf32>
    %318 = arith.mulf %317, %311 : vector<1x256xf32>
    %319 = arith.addf %262, %318 : vector<1x256xf32>
    %c57_41 = arith.constant 57 : index
    %320 = memref.load %arg1[%c57_41] : memref<81xf32, #tpu.memory_space<smem>>
    %321 = vector.broadcast %320 : f32 to vector<1x256xf32>
    %322 = arith.mulf %321, %311 : vector<1x256xf32>
    %323 = arith.addf %266, %322 : vector<1x256xf32>
    %324 = vector.extract_strided_slice %271 {offsets = [4, 0], sizes = [1, 256], strides = [1, 1]} : vector<6x256xf32> to vector<1x256xf32>
    %c12_42 = arith.constant 12 : index
    %325 = memref.load %arg1[%c12_42] : memref<81xf32, #tpu.memory_space<smem>>
    %326 = vector.broadcast %325 : f32 to vector<1x256xf32>
    %327 = arith.mulf %326, %324 : vector<1x256xf32>
    %328 = arith.addf %315, %327 : vector<1x256xf32>
    %c39_43 = arith.constant 39 : index
    %329 = memref.load %arg1[%c39_43] : memref<81xf32, #tpu.memory_space<smem>>
    %330 = vector.broadcast %329 : f32 to vector<1x256xf32>
    %331 = arith.mulf %330, %324 : vector<1x256xf32>
    %332 = arith.addf %319, %331 : vector<1x256xf32>
    %c66_44 = arith.constant 66 : index
    %333 = memref.load %arg1[%c66_44] : memref<81xf32, #tpu.memory_space<smem>>
    %334 = vector.broadcast %333 : f32 to vector<1x256xf32>
    %335 = arith.mulf %334, %324 : vector<1x256xf32>
    %336 = arith.addf %323, %335 : vector<1x256xf32>
    %337 = vector.extract_strided_slice %271 {offsets = [5, 0], sizes = [1, 256], strides = [1, 1]} : vector<6x256xf32> to vector<1x256xf32>
    %c21_45 = arith.constant 21 : index
    %338 = memref.load %arg1[%c21_45] : memref<81xf32, #tpu.memory_space<smem>>
    %339 = vector.broadcast %338 : f32 to vector<1x256xf32>
    %340 = arith.mulf %339, %337 : vector<1x256xf32>
    %341 = arith.addf %328, %340 : vector<1x256xf32>
    %c48_46 = arith.constant 48 : index
    %342 = memref.load %arg1[%c48_46] : memref<81xf32, #tpu.memory_space<smem>>
    %343 = vector.broadcast %342 : f32 to vector<1x256xf32>
    %344 = arith.mulf %343, %337 : vector<1x256xf32>
    %345 = arith.addf %332, %344 : vector<1x256xf32>
    %c75_47 = arith.constant 75 : index
    %346 = memref.load %arg1[%c75_47] : memref<81xf32, #tpu.memory_space<smem>>
    %347 = vector.broadcast %346 : f32 to vector<1x256xf32>
    %348 = arith.mulf %347, %337 : vector<1x256xf32>
    %349 = arith.addf %336, %348 : vector<1x256xf32>
    %350 = vector.extract_strided_slice %2 {offsets = [0, 128], sizes = [6, 256], strides = [1, 1]} : vector<6x512xf32> to vector<6x256xf32>
    %351 = vector.extract_strided_slice %350 {offsets = [0, 0], sizes = [1, 256], strides = [1, 1]} : vector<6x256xf32> to vector<1x256xf32>
    %c4 = arith.constant 4 : index
    %352 = memref.load %arg1[%c4] : memref<81xf32, #tpu.memory_space<smem>>
    %353 = vector.broadcast %352 : f32 to vector<1x256xf32>
    %354 = arith.mulf %353, %351 : vector<1x256xf32>
    %355 = arith.addf %302, %354 : vector<1x256xf32>
    %c31 = arith.constant 31 : index
    %356 = memref.load %arg1[%c31] : memref<81xf32, #tpu.memory_space<smem>>
    %357 = vector.broadcast %356 : f32 to vector<1x256xf32>
    %358 = arith.mulf %357, %351 : vector<1x256xf32>
    %359 = arith.addf %306, %358 : vector<1x256xf32>
    %c58 = arith.constant 58 : index
    %360 = memref.load %arg1[%c58] : memref<81xf32, #tpu.memory_space<smem>>
    %361 = vector.broadcast %360 : f32 to vector<1x256xf32>
    %362 = arith.mulf %361, %351 : vector<1x256xf32>
    %363 = arith.addf %310, %362 : vector<1x256xf32>
    %364 = vector.extract_strided_slice %350 {offsets = [1, 0], sizes = [1, 256], strides = [1, 1]} : vector<6x256xf32> to vector<1x256xf32>
    %c13 = arith.constant 13 : index
    %365 = memref.load %arg1[%c13] : memref<81xf32, #tpu.memory_space<smem>>
    %366 = vector.broadcast %365 : f32 to vector<1x256xf32>
    %367 = arith.mulf %366, %364 : vector<1x256xf32>
    %368 = arith.addf %355, %367 : vector<1x256xf32>
    %c40 = arith.constant 40 : index
    %369 = memref.load %arg1[%c40] : memref<81xf32, #tpu.memory_space<smem>>
    %370 = vector.broadcast %369 : f32 to vector<1x256xf32>
    %371 = arith.mulf %370, %364 : vector<1x256xf32>
    %372 = arith.addf %359, %371 : vector<1x256xf32>
    %c67 = arith.constant 67 : index
    %373 = memref.load %arg1[%c67] : memref<81xf32, #tpu.memory_space<smem>>
    %374 = vector.broadcast %373 : f32 to vector<1x256xf32>
    %375 = arith.mulf %374, %364 : vector<1x256xf32>
    %376 = arith.addf %363, %375 : vector<1x256xf32>
    %377 = vector.extract_strided_slice %350 {offsets = [2, 0], sizes = [1, 256], strides = [1, 1]} : vector<6x256xf32> to vector<1x256xf32>
    %c22 = arith.constant 22 : index
    %378 = memref.load %arg1[%c22] : memref<81xf32, #tpu.memory_space<smem>>
    %379 = vector.broadcast %378 : f32 to vector<1x256xf32>
    %380 = arith.mulf %379, %377 : vector<1x256xf32>
    %381 = arith.addf %368, %380 : vector<1x256xf32>
    %c49 = arith.constant 49 : index
    %382 = memref.load %arg1[%c49] : memref<81xf32, #tpu.memory_space<smem>>
    %383 = vector.broadcast %382 : f32 to vector<1x256xf32>
    %384 = arith.mulf %383, %377 : vector<1x256xf32>
    %385 = arith.addf %372, %384 : vector<1x256xf32>
    %c76 = arith.constant 76 : index
    %386 = memref.load %arg1[%c76] : memref<81xf32, #tpu.memory_space<smem>>
    %387 = vector.broadcast %386 : f32 to vector<1x256xf32>
    %388 = arith.mulf %387, %377 : vector<1x256xf32>
    %389 = arith.addf %376, %388 : vector<1x256xf32>
    %390 = vector.extract_strided_slice %350 {offsets = [3, 0], sizes = [1, 256], strides = [1, 1]} : vector<6x256xf32> to vector<1x256xf32>
    %c4_48 = arith.constant 4 : index
    %391 = memref.load %arg1[%c4_48] : memref<81xf32, #tpu.memory_space<smem>>
    %392 = vector.broadcast %391 : f32 to vector<1x256xf32>
    %393 = arith.mulf %392, %390 : vector<1x256xf32>
    %394 = arith.addf %341, %393 : vector<1x256xf32>
    %c31_49 = arith.constant 31 : index
    %395 = memref.load %arg1[%c31_49] : memref<81xf32, #tpu.memory_space<smem>>
    %396 = vector.broadcast %395 : f32 to vector<1x256xf32>
    %397 = arith.mulf %396, %390 : vector<1x256xf32>
    %398 = arith.addf %345, %397 : vector<1x256xf32>
    %c58_50 = arith.constant 58 : index
    %399 = memref.load %arg1[%c58_50] : memref<81xf32, #tpu.memory_space<smem>>
    %400 = vector.broadcast %399 : f32 to vector<1x256xf32>
    %401 = arith.mulf %400, %390 : vector<1x256xf32>
    %402 = arith.addf %349, %401 : vector<1x256xf32>
    %403 = vector.extract_strided_slice %350 {offsets = [4, 0], sizes = [1, 256], strides = [1, 1]} : vector<6x256xf32> to vector<1x256xf32>
    %c13_51 = arith.constant 13 : index
    %404 = memref.load %arg1[%c13_51] : memref<81xf32, #tpu.memory_space<smem>>
    %405 = vector.broadcast %404 : f32 to vector<1x256xf32>
    %406 = arith.mulf %405, %403 : vector<1x256xf32>
    %407 = arith.addf %394, %406 : vector<1x256xf32>
    %c40_52 = arith.constant 40 : index
    %408 = memref.load %arg1[%c40_52] : memref<81xf32, #tpu.memory_space<smem>>
    %409 = vector.broadcast %408 : f32 to vector<1x256xf32>
    %410 = arith.mulf %409, %403 : vector<1x256xf32>
    %411 = arith.addf %398, %410 : vector<1x256xf32>
    %c67_53 = arith.constant 67 : index
    %412 = memref.load %arg1[%c67_53] : memref<81xf32, #tpu.memory_space<smem>>
    %413 = vector.broadcast %412 : f32 to vector<1x256xf32>
    %414 = arith.mulf %413, %403 : vector<1x256xf32>
    %415 = arith.addf %402, %414 : vector<1x256xf32>
    %416 = vector.extract_strided_slice %350 {offsets = [5, 0], sizes = [1, 256], strides = [1, 1]} : vector<6x256xf32> to vector<1x256xf32>
    %c22_54 = arith.constant 22 : index
    %417 = memref.load %arg1[%c22_54] : memref<81xf32, #tpu.memory_space<smem>>
    %418 = vector.broadcast %417 : f32 to vector<1x256xf32>
    %419 = arith.mulf %418, %416 : vector<1x256xf32>
    %420 = arith.addf %407, %419 : vector<1x256xf32>
    %c49_55 = arith.constant 49 : index
    %421 = memref.load %arg1[%c49_55] : memref<81xf32, #tpu.memory_space<smem>>
    %422 = vector.broadcast %421 : f32 to vector<1x256xf32>
    %423 = arith.mulf %422, %416 : vector<1x256xf32>
    %424 = arith.addf %411, %423 : vector<1x256xf32>
    %c76_56 = arith.constant 76 : index
    %425 = memref.load %arg1[%c76_56] : memref<81xf32, #tpu.memory_space<smem>>
    %426 = vector.broadcast %425 : f32 to vector<1x256xf32>
    %427 = arith.mulf %426, %416 : vector<1x256xf32>
    %428 = arith.addf %415, %427 : vector<1x256xf32>
    %429 = vector.extract_strided_slice %2 {offsets = [0, 129], sizes = [6, 256], strides = [1, 1]} : vector<6x512xf32> to vector<6x256xf32>
    %cst_57 = arith.constant 0.000000e+00 : f32
    %430 = vector.shape_cast %9 : vector<1x256xi1> to vector<1x256xi1>
    %431 = vector.broadcast %430 : vector<1x256xi1> to vector<6x256xi1>
    %432 = vector.broadcast %cst_57 : f32 to vector<6x256xf32>
    %433 = arith.select %431, %429, %432 : vector<6x256xi1>, vector<6x256xf32>
    %434 = vector.extract_strided_slice %433 {offsets = [0, 0], sizes = [1, 256], strides = [1, 1]} : vector<6x256xf32> to vector<1x256xf32>
    %c5 = arith.constant 5 : index
    %435 = memref.load %arg1[%c5] : memref<81xf32, #tpu.memory_space<smem>>
    %436 = vector.broadcast %435 : f32 to vector<1x256xf32>
    %437 = arith.mulf %436, %434 : vector<1x256xf32>
    %438 = arith.addf %381, %437 : vector<1x256xf32>
    %c32 = arith.constant 32 : index
    %439 = memref.load %arg1[%c32] : memref<81xf32, #tpu.memory_space<smem>>
    %440 = vector.broadcast %439 : f32 to vector<1x256xf32>
    %441 = arith.mulf %440, %434 : vector<1x256xf32>
    %442 = arith.addf %385, %441 : vector<1x256xf32>
    %c59 = arith.constant 59 : index
    %443 = memref.load %arg1[%c59] : memref<81xf32, #tpu.memory_space<smem>>
    %444 = vector.broadcast %443 : f32 to vector<1x256xf32>
    %445 = arith.mulf %444, %434 : vector<1x256xf32>
    %446 = arith.addf %389, %445 : vector<1x256xf32>
    %447 = vector.extract_strided_slice %433 {offsets = [1, 0], sizes = [1, 256], strides = [1, 1]} : vector<6x256xf32> to vector<1x256xf32>
    %c14 = arith.constant 14 : index
    %448 = memref.load %arg1[%c14] : memref<81xf32, #tpu.memory_space<smem>>
    %449 = vector.broadcast %448 : f32 to vector<1x256xf32>
    %450 = arith.mulf %449, %447 : vector<1x256xf32>
    %451 = arith.addf %438, %450 : vector<1x256xf32>
    %c41 = arith.constant 41 : index
    %452 = memref.load %arg1[%c41] : memref<81xf32, #tpu.memory_space<smem>>
    %453 = vector.broadcast %452 : f32 to vector<1x256xf32>
    %454 = arith.mulf %453, %447 : vector<1x256xf32>
    %455 = arith.addf %442, %454 : vector<1x256xf32>
    %c68 = arith.constant 68 : index
    %456 = memref.load %arg1[%c68] : memref<81xf32, #tpu.memory_space<smem>>
    %457 = vector.broadcast %456 : f32 to vector<1x256xf32>
    %458 = arith.mulf %457, %447 : vector<1x256xf32>
    %459 = arith.addf %446, %458 : vector<1x256xf32>
    %460 = vector.extract_strided_slice %433 {offsets = [2, 0], sizes = [1, 256], strides = [1, 1]} : vector<6x256xf32> to vector<1x256xf32>
    %c23 = arith.constant 23 : index
    %461 = memref.load %arg1[%c23] : memref<81xf32, #tpu.memory_space<smem>>
    %462 = vector.broadcast %461 : f32 to vector<1x256xf32>
    %463 = arith.mulf %462, %460 : vector<1x256xf32>
    %464 = arith.addf %451, %463 : vector<1x256xf32>
    %c50 = arith.constant 50 : index
    %465 = memref.load %arg1[%c50] : memref<81xf32, #tpu.memory_space<smem>>
    %466 = vector.broadcast %465 : f32 to vector<1x256xf32>
    %467 = arith.mulf %466, %460 : vector<1x256xf32>
    %468 = arith.addf %455, %467 : vector<1x256xf32>
    %c77 = arith.constant 77 : index
    %469 = memref.load %arg1[%c77] : memref<81xf32, #tpu.memory_space<smem>>
    %470 = vector.broadcast %469 : f32 to vector<1x256xf32>
    %471 = arith.mulf %470, %460 : vector<1x256xf32>
    %472 = arith.addf %459, %471 : vector<1x256xf32>
    %473 = vector.extract_strided_slice %433 {offsets = [3, 0], sizes = [1, 256], strides = [1, 1]} : vector<6x256xf32> to vector<1x256xf32>
    %c5_58 = arith.constant 5 : index
    %474 = memref.load %arg1[%c5_58] : memref<81xf32, #tpu.memory_space<smem>>
    %475 = vector.broadcast %474 : f32 to vector<1x256xf32>
    %476 = arith.mulf %475, %473 : vector<1x256xf32>
    %477 = arith.addf %420, %476 : vector<1x256xf32>
    %c32_59 = arith.constant 32 : index
    %478 = memref.load %arg1[%c32_59] : memref<81xf32, #tpu.memory_space<smem>>
    %479 = vector.broadcast %478 : f32 to vector<1x256xf32>
    %480 = arith.mulf %479, %473 : vector<1x256xf32>
    %481 = arith.addf %424, %480 : vector<1x256xf32>
    %c59_60 = arith.constant 59 : index
    %482 = memref.load %arg1[%c59_60] : memref<81xf32, #tpu.memory_space<smem>>
    %483 = vector.broadcast %482 : f32 to vector<1x256xf32>
    %484 = arith.mulf %483, %473 : vector<1x256xf32>
    %485 = arith.addf %428, %484 : vector<1x256xf32>
    %486 = vector.extract_strided_slice %433 {offsets = [4, 0], sizes = [1, 256], strides = [1, 1]} : vector<6x256xf32> to vector<1x256xf32>
    %c14_61 = arith.constant 14 : index
    %487 = memref.load %arg1[%c14_61] : memref<81xf32, #tpu.memory_space<smem>>
    %488 = vector.broadcast %487 : f32 to vector<1x256xf32>
    %489 = arith.mulf %488, %486 : vector<1x256xf32>
    %490 = arith.addf %477, %489 : vector<1x256xf32>
    %c41_62 = arith.constant 41 : index
    %491 = memref.load %arg1[%c41_62] : memref<81xf32, #tpu.memory_space<smem>>
    %492 = vector.broadcast %491 : f32 to vector<1x256xf32>
    %493 = arith.mulf %492, %486 : vector<1x256xf32>
    %494 = arith.addf %481, %493 : vector<1x256xf32>
    %c68_63 = arith.constant 68 : index
    %495 = memref.load %arg1[%c68_63] : memref<81xf32, #tpu.memory_space<smem>>
    %496 = vector.broadcast %495 : f32 to vector<1x256xf32>
    %497 = arith.mulf %496, %486 : vector<1x256xf32>
    %498 = arith.addf %485, %497 : vector<1x256xf32>
    %499 = vector.extract_strided_slice %433 {offsets = [5, 0], sizes = [1, 256], strides = [1, 1]} : vector<6x256xf32> to vector<1x256xf32>
    %c23_64 = arith.constant 23 : index
    %500 = memref.load %arg1[%c23_64] : memref<81xf32, #tpu.memory_space<smem>>
    %501 = vector.broadcast %500 : f32 to vector<1x256xf32>
    %502 = arith.mulf %501, %499 : vector<1x256xf32>
    %503 = arith.addf %490, %502 : vector<1x256xf32>
    %c50_65 = arith.constant 50 : index
    %504 = memref.load %arg1[%c50_65] : memref<81xf32, #tpu.memory_space<smem>>
    %505 = vector.broadcast %504 : f32 to vector<1x256xf32>
    %506 = arith.mulf %505, %499 : vector<1x256xf32>
    %507 = arith.addf %494, %506 : vector<1x256xf32>
    %c77_66 = arith.constant 77 : index
    %508 = memref.load %arg1[%c77_66] : memref<81xf32, #tpu.memory_space<smem>>
    %509 = vector.broadcast %508 : f32 to vector<1x256xf32>
    %510 = arith.mulf %509, %499 : vector<1x256xf32>
    %511 = arith.addf %498, %510 : vector<1x256xf32>
    %512 = vector.extract_strided_slice %2 {offsets = [0, 143], sizes = [6, 256], strides = [1, 1]} : vector<6x512xf32> to vector<6x256xf32>
    %cst_67 = arith.constant 0.000000e+00 : f32
    %513 = vector.shape_cast %7 : vector<1x256xi1> to vector<1x256xi1>
    %514 = vector.broadcast %513 : vector<1x256xi1> to vector<6x256xi1>
    %515 = vector.broadcast %cst_67 : f32 to vector<6x256xf32>
    %516 = arith.select %514, %512, %515 : vector<6x256xi1>, vector<6x256xf32>
    %517 = vector.extract_strided_slice %516 {offsets = [0, 0], sizes = [1, 256], strides = [1, 1]} : vector<6x256xf32> to vector<1x256xf32>
    %c6 = arith.constant 6 : index
    %518 = memref.load %arg1[%c6] : memref<81xf32, #tpu.memory_space<smem>>
    %519 = vector.broadcast %518 : f32 to vector<1x256xf32>
    %520 = arith.mulf %519, %517 : vector<1x256xf32>
    %521 = arith.addf %464, %520 : vector<1x256xf32>
    %c33 = arith.constant 33 : index
    %522 = memref.load %arg1[%c33] : memref<81xf32, #tpu.memory_space<smem>>
    %523 = vector.broadcast %522 : f32 to vector<1x256xf32>
    %524 = arith.mulf %523, %517 : vector<1x256xf32>
    %525 = arith.addf %468, %524 : vector<1x256xf32>
    %c60 = arith.constant 60 : index
    %526 = memref.load %arg1[%c60] : memref<81xf32, #tpu.memory_space<smem>>
    %527 = vector.broadcast %526 : f32 to vector<1x256xf32>
    %528 = arith.mulf %527, %517 : vector<1x256xf32>
    %529 = arith.addf %472, %528 : vector<1x256xf32>
    %530 = vector.extract_strided_slice %516 {offsets = [1, 0], sizes = [1, 256], strides = [1, 1]} : vector<6x256xf32> to vector<1x256xf32>
    %c15 = arith.constant 15 : index
    %531 = memref.load %arg1[%c15] : memref<81xf32, #tpu.memory_space<smem>>
    %532 = vector.broadcast %531 : f32 to vector<1x256xf32>
    %533 = arith.mulf %532, %530 : vector<1x256xf32>
    %534 = arith.addf %521, %533 : vector<1x256xf32>
    %c42 = arith.constant 42 : index
    %535 = memref.load %arg1[%c42] : memref<81xf32, #tpu.memory_space<smem>>
    %536 = vector.broadcast %535 : f32 to vector<1x256xf32>
    %537 = arith.mulf %536, %530 : vector<1x256xf32>
    %538 = arith.addf %525, %537 : vector<1x256xf32>
    %c69 = arith.constant 69 : index
    %539 = memref.load %arg1[%c69] : memref<81xf32, #tpu.memory_space<smem>>
    %540 = vector.broadcast %539 : f32 to vector<1x256xf32>
    %541 = arith.mulf %540, %530 : vector<1x256xf32>
    %542 = arith.addf %529, %541 : vector<1x256xf32>
    %543 = vector.extract_strided_slice %516 {offsets = [2, 0], sizes = [1, 256], strides = [1, 1]} : vector<6x256xf32> to vector<1x256xf32>
    %c24 = arith.constant 24 : index
    %544 = memref.load %arg1[%c24] : memref<81xf32, #tpu.memory_space<smem>>
    %545 = vector.broadcast %544 : f32 to vector<1x256xf32>
    %546 = arith.mulf %545, %543 : vector<1x256xf32>
    %547 = arith.addf %534, %546 : vector<1x256xf32>
    %c51 = arith.constant 51 : index
    %548 = memref.load %arg1[%c51] : memref<81xf32, #tpu.memory_space<smem>>
    %549 = vector.broadcast %548 : f32 to vector<1x256xf32>
    %550 = arith.mulf %549, %543 : vector<1x256xf32>
    %551 = arith.addf %538, %550 : vector<1x256xf32>
    %c78 = arith.constant 78 : index
    %552 = memref.load %arg1[%c78] : memref<81xf32, #tpu.memory_space<smem>>
    %553 = vector.broadcast %552 : f32 to vector<1x256xf32>
    %554 = arith.mulf %553, %543 : vector<1x256xf32>
    %555 = arith.addf %542, %554 : vector<1x256xf32>
    %556 = vector.extract_strided_slice %516 {offsets = [3, 0], sizes = [1, 256], strides = [1, 1]} : vector<6x256xf32> to vector<1x256xf32>
    %c6_68 = arith.constant 6 : index
    %557 = memref.load %arg1[%c6_68] : memref<81xf32, #tpu.memory_space<smem>>
    %558 = vector.broadcast %557 : f32 to vector<1x256xf32>
    %559 = arith.mulf %558, %556 : vector<1x256xf32>
    %560 = arith.addf %503, %559 : vector<1x256xf32>
    %c33_69 = arith.constant 33 : index
    %561 = memref.load %arg1[%c33_69] : memref<81xf32, #tpu.memory_space<smem>>
    %562 = vector.broadcast %561 : f32 to vector<1x256xf32>
    %563 = arith.mulf %562, %556 : vector<1x256xf32>
    %564 = arith.addf %507, %563 : vector<1x256xf32>
    %c60_70 = arith.constant 60 : index
    %565 = memref.load %arg1[%c60_70] : memref<81xf32, #tpu.memory_space<smem>>
    %566 = vector.broadcast %565 : f32 to vector<1x256xf32>
    %567 = arith.mulf %566, %556 : vector<1x256xf32>
    %568 = arith.addf %511, %567 : vector<1x256xf32>
    %569 = vector.extract_strided_slice %516 {offsets = [4, 0], sizes = [1, 256], strides = [1, 1]} : vector<6x256xf32> to vector<1x256xf32>
    %c15_71 = arith.constant 15 : index
    %570 = memref.load %arg1[%c15_71] : memref<81xf32, #tpu.memory_space<smem>>
    %571 = vector.broadcast %570 : f32 to vector<1x256xf32>
    %572 = arith.mulf %571, %569 : vector<1x256xf32>
    %573 = arith.addf %560, %572 : vector<1x256xf32>
    %c42_72 = arith.constant 42 : index
    %574 = memref.load %arg1[%c42_72] : memref<81xf32, #tpu.memory_space<smem>>
    %575 = vector.broadcast %574 : f32 to vector<1x256xf32>
    %576 = arith.mulf %575, %569 : vector<1x256xf32>
    %577 = arith.addf %564, %576 : vector<1x256xf32>
    %c69_73 = arith.constant 69 : index
    %578 = memref.load %arg1[%c69_73] : memref<81xf32, #tpu.memory_space<smem>>
    %579 = vector.broadcast %578 : f32 to vector<1x256xf32>
    %580 = arith.mulf %579, %569 : vector<1x256xf32>
    %581 = arith.addf %568, %580 : vector<1x256xf32>
    %582 = vector.extract_strided_slice %516 {offsets = [5, 0], sizes = [1, 256], strides = [1, 1]} : vector<6x256xf32> to vector<1x256xf32>
    %c24_74 = arith.constant 24 : index
    %583 = memref.load %arg1[%c24_74] : memref<81xf32, #tpu.memory_space<smem>>
    %584 = vector.broadcast %583 : f32 to vector<1x256xf32>
    %585 = arith.mulf %584, %582 : vector<1x256xf32>
    %586 = arith.addf %573, %585 : vector<1x256xf32>
    %c51_75 = arith.constant 51 : index
    %587 = memref.load %arg1[%c51_75] : memref<81xf32, #tpu.memory_space<smem>>
    %588 = vector.broadcast %587 : f32 to vector<1x256xf32>
    %589 = arith.mulf %588, %582 : vector<1x256xf32>
    %590 = arith.addf %577, %589 : vector<1x256xf32>
    %c78_76 = arith.constant 78 : index
    %591 = memref.load %arg1[%c78_76] : memref<81xf32, #tpu.memory_space<smem>>
    %592 = vector.broadcast %591 : f32 to vector<1x256xf32>
    %593 = arith.mulf %592, %582 : vector<1x256xf32>
    %594 = arith.addf %581, %593 : vector<1x256xf32>
    %595 = vector.extract_strided_slice %2 {offsets = [0, 144], sizes = [6, 256], strides = [1, 1]} : vector<6x512xf32> to vector<6x256xf32>
    %596 = vector.extract_strided_slice %595 {offsets = [0, 0], sizes = [1, 256], strides = [1, 1]} : vector<6x256xf32> to vector<1x256xf32>
    %c7 = arith.constant 7 : index
    %597 = memref.load %arg1[%c7] : memref<81xf32, #tpu.memory_space<smem>>
    %598 = vector.broadcast %597 : f32 to vector<1x256xf32>
    %599 = arith.mulf %598, %596 : vector<1x256xf32>
    %600 = arith.addf %547, %599 : vector<1x256xf32>
    %c34 = arith.constant 34 : index
    %601 = memref.load %arg1[%c34] : memref<81xf32, #tpu.memory_space<smem>>
    %602 = vector.broadcast %601 : f32 to vector<1x256xf32>
    %603 = arith.mulf %602, %596 : vector<1x256xf32>
    %604 = arith.addf %551, %603 : vector<1x256xf32>
    %c61 = arith.constant 61 : index
    %605 = memref.load %arg1[%c61] : memref<81xf32, #tpu.memory_space<smem>>
    %606 = vector.broadcast %605 : f32 to vector<1x256xf32>
    %607 = arith.mulf %606, %596 : vector<1x256xf32>
    %608 = arith.addf %555, %607 : vector<1x256xf32>
    %609 = vector.extract_strided_slice %595 {offsets = [1, 0], sizes = [1, 256], strides = [1, 1]} : vector<6x256xf32> to vector<1x256xf32>
    %c16 = arith.constant 16 : index
    %610 = memref.load %arg1[%c16] : memref<81xf32, #tpu.memory_space<smem>>
    %611 = vector.broadcast %610 : f32 to vector<1x256xf32>
    %612 = arith.mulf %611, %609 : vector<1x256xf32>
    %613 = arith.addf %600, %612 : vector<1x256xf32>
    %c43 = arith.constant 43 : index
    %614 = memref.load %arg1[%c43] : memref<81xf32, #tpu.memory_space<smem>>
    %615 = vector.broadcast %614 : f32 to vector<1x256xf32>
    %616 = arith.mulf %615, %609 : vector<1x256xf32>
    %617 = arith.addf %604, %616 : vector<1x256xf32>
    %c70 = arith.constant 70 : index
    %618 = memref.load %arg1[%c70] : memref<81xf32, #tpu.memory_space<smem>>
    %619 = vector.broadcast %618 : f32 to vector<1x256xf32>
    %620 = arith.mulf %619, %609 : vector<1x256xf32>
    %621 = arith.addf %608, %620 : vector<1x256xf32>
    %622 = vector.extract_strided_slice %595 {offsets = [2, 0], sizes = [1, 256], strides = [1, 1]} : vector<6x256xf32> to vector<1x256xf32>
    %c25 = arith.constant 25 : index
    %623 = memref.load %arg1[%c25] : memref<81xf32, #tpu.memory_space<smem>>
    %624 = vector.broadcast %623 : f32 to vector<1x256xf32>
    %625 = arith.mulf %624, %622 : vector<1x256xf32>
    %626 = arith.addf %613, %625 : vector<1x256xf32>
    %c52 = arith.constant 52 : index
    %627 = memref.load %arg1[%c52] : memref<81xf32, #tpu.memory_space<smem>>
    %628 = vector.broadcast %627 : f32 to vector<1x256xf32>
    %629 = arith.mulf %628, %622 : vector<1x256xf32>
    %630 = arith.addf %617, %629 : vector<1x256xf32>
    %c79 = arith.constant 79 : index
    %631 = memref.load %arg1[%c79] : memref<81xf32, #tpu.memory_space<smem>>
    %632 = vector.broadcast %631 : f32 to vector<1x256xf32>
    %633 = arith.mulf %632, %622 : vector<1x256xf32>
    %634 = arith.addf %621, %633 : vector<1x256xf32>
    %635 = vector.extract_strided_slice %595 {offsets = [3, 0], sizes = [1, 256], strides = [1, 1]} : vector<6x256xf32> to vector<1x256xf32>
    %c7_77 = arith.constant 7 : index
    %636 = memref.load %arg1[%c7_77] : memref<81xf32, #tpu.memory_space<smem>>
    %637 = vector.broadcast %636 : f32 to vector<1x256xf32>
    %638 = arith.mulf %637, %635 : vector<1x256xf32>
    %639 = arith.addf %586, %638 : vector<1x256xf32>
    %c34_78 = arith.constant 34 : index
    %640 = memref.load %arg1[%c34_78] : memref<81xf32, #tpu.memory_space<smem>>
    %641 = vector.broadcast %640 : f32 to vector<1x256xf32>
    %642 = arith.mulf %641, %635 : vector<1x256xf32>
    %643 = arith.addf %590, %642 : vector<1x256xf32>
    %c61_79 = arith.constant 61 : index
    %644 = memref.load %arg1[%c61_79] : memref<81xf32, #tpu.memory_space<smem>>
    %645 = vector.broadcast %644 : f32 to vector<1x256xf32>
    %646 = arith.mulf %645, %635 : vector<1x256xf32>
    %647 = arith.addf %594, %646 : vector<1x256xf32>
    %648 = vector.extract_strided_slice %595 {offsets = [4, 0], sizes = [1, 256], strides = [1, 1]} : vector<6x256xf32> to vector<1x256xf32>
    %c16_80 = arith.constant 16 : index
    %649 = memref.load %arg1[%c16_80] : memref<81xf32, #tpu.memory_space<smem>>
    %650 = vector.broadcast %649 : f32 to vector<1x256xf32>
    %651 = arith.mulf %650, %648 : vector<1x256xf32>
    %652 = arith.addf %639, %651 : vector<1x256xf32>
    %c43_81 = arith.constant 43 : index
    %653 = memref.load %arg1[%c43_81] : memref<81xf32, #tpu.memory_space<smem>>
    %654 = vector.broadcast %653 : f32 to vector<1x256xf32>
    %655 = arith.mulf %654, %648 : vector<1x256xf32>
    %656 = arith.addf %643, %655 : vector<1x256xf32>
    %c70_82 = arith.constant 70 : index
    %657 = memref.load %arg1[%c70_82] : memref<81xf32, #tpu.memory_space<smem>>
    %658 = vector.broadcast %657 : f32 to vector<1x256xf32>
    %659 = arith.mulf %658, %648 : vector<1x256xf32>
    %660 = arith.addf %647, %659 : vector<1x256xf32>
    %661 = vector.extract_strided_slice %595 {offsets = [5, 0], sizes = [1, 256], strides = [1, 1]} : vector<6x256xf32> to vector<1x256xf32>
    %c25_83 = arith.constant 25 : index
    %662 = memref.load %arg1[%c25_83] : memref<81xf32, #tpu.memory_space<smem>>
    %663 = vector.broadcast %662 : f32 to vector<1x256xf32>
    %664 = arith.mulf %663, %661 : vector<1x256xf32>
    %665 = arith.addf %652, %664 : vector<1x256xf32>
    %c52_84 = arith.constant 52 : index
    %666 = memref.load %arg1[%c52_84] : memref<81xf32, #tpu.memory_space<smem>>
    %667 = vector.broadcast %666 : f32 to vector<1x256xf32>
    %668 = arith.mulf %667, %661 : vector<1x256xf32>
    %669 = arith.addf %656, %668 : vector<1x256xf32>
    %c79_85 = arith.constant 79 : index
    %670 = memref.load %arg1[%c79_85] : memref<81xf32, #tpu.memory_space<smem>>
    %671 = vector.broadcast %670 : f32 to vector<1x256xf32>
    %672 = arith.mulf %671, %661 : vector<1x256xf32>
    %673 = arith.addf %660, %672 : vector<1x256xf32>
    %674 = vector.extract_strided_slice %2 {offsets = [0, 145], sizes = [6, 256], strides = [1, 1]} : vector<6x512xf32> to vector<6x256xf32>
    %cst_86 = arith.constant 0.000000e+00 : f32
    %675 = vector.shape_cast %9 : vector<1x256xi1> to vector<1x256xi1>
    %676 = vector.broadcast %675 : vector<1x256xi1> to vector<6x256xi1>
    %677 = vector.broadcast %cst_86 : f32 to vector<6x256xf32>
    %678 = arith.select %676, %674, %677 : vector<6x256xi1>, vector<6x256xf32>
    %679 = vector.extract_strided_slice %678 {offsets = [0, 0], sizes = [1, 256], strides = [1, 1]} : vector<6x256xf32> to vector<1x256xf32>
    %c8 = arith.constant 8 : index
    %680 = memref.load %arg1[%c8] : memref<81xf32, #tpu.memory_space<smem>>
    %681 = vector.broadcast %680 : f32 to vector<1x256xf32>
    %682 = arith.mulf %681, %679 : vector<1x256xf32>
    %683 = arith.addf %626, %682 : vector<1x256xf32>
    %c35 = arith.constant 35 : index
    %684 = memref.load %arg1[%c35] : memref<81xf32, #tpu.memory_space<smem>>
    %685 = vector.broadcast %684 : f32 to vector<1x256xf32>
    %686 = arith.mulf %685, %679 : vector<1x256xf32>
    %687 = arith.addf %630, %686 : vector<1x256xf32>
    %c62 = arith.constant 62 : index
    %688 = memref.load %arg1[%c62] : memref<81xf32, #tpu.memory_space<smem>>
    %689 = vector.broadcast %688 : f32 to vector<1x256xf32>
    %690 = arith.mulf %689, %679 : vector<1x256xf32>
    %691 = arith.addf %634, %690 : vector<1x256xf32>
    %692 = vector.extract_strided_slice %678 {offsets = [1, 0], sizes = [1, 256], strides = [1, 1]} : vector<6x256xf32> to vector<1x256xf32>
    %c17 = arith.constant 17 : index
    %693 = memref.load %arg1[%c17] : memref<81xf32, #tpu.memory_space<smem>>
    %694 = vector.broadcast %693 : f32 to vector<1x256xf32>
    %695 = arith.mulf %694, %692 : vector<1x256xf32>
    %696 = arith.addf %683, %695 : vector<1x256xf32>
    %c44 = arith.constant 44 : index
    %697 = memref.load %arg1[%c44] : memref<81xf32, #tpu.memory_space<smem>>
    %698 = vector.broadcast %697 : f32 to vector<1x256xf32>
    %699 = arith.mulf %698, %692 : vector<1x256xf32>
    %700 = arith.addf %687, %699 : vector<1x256xf32>
    %c71 = arith.constant 71 : index
    %701 = memref.load %arg1[%c71] : memref<81xf32, #tpu.memory_space<smem>>
    %702 = vector.broadcast %701 : f32 to vector<1x256xf32>
    %703 = arith.mulf %702, %692 : vector<1x256xf32>
    %704 = arith.addf %691, %703 : vector<1x256xf32>
    %705 = vector.extract_strided_slice %678 {offsets = [2, 0], sizes = [1, 256], strides = [1, 1]} : vector<6x256xf32> to vector<1x256xf32>
    %c26 = arith.constant 26 : index
    %706 = memref.load %arg1[%c26] : memref<81xf32, #tpu.memory_space<smem>>
    %707 = vector.broadcast %706 : f32 to vector<1x256xf32>
    %708 = arith.mulf %707, %705 : vector<1x256xf32>
    %709 = arith.addf %696, %708 : vector<1x256xf32>
    %c53 = arith.constant 53 : index
    %710 = memref.load %arg1[%c53] : memref<81xf32, #tpu.memory_space<smem>>
    %711 = vector.broadcast %710 : f32 to vector<1x256xf32>
    %712 = arith.mulf %711, %705 : vector<1x256xf32>
    %713 = arith.addf %700, %712 : vector<1x256xf32>
    %c80 = arith.constant 80 : index
    %714 = memref.load %arg1[%c80] : memref<81xf32, #tpu.memory_space<smem>>
    %715 = vector.broadcast %714 : f32 to vector<1x256xf32>
    %716 = arith.mulf %715, %705 : vector<1x256xf32>
    %717 = arith.addf %704, %716 : vector<1x256xf32>
    %718 = vector.extract_strided_slice %678 {offsets = [3, 0], sizes = [1, 256], strides = [1, 1]} : vector<6x256xf32> to vector<1x256xf32>
    %c8_87 = arith.constant 8 : index
    %719 = memref.load %arg1[%c8_87] : memref<81xf32, #tpu.memory_space<smem>>
    %720 = vector.broadcast %719 : f32 to vector<1x256xf32>
    %721 = arith.mulf %720, %718 : vector<1x256xf32>
    %722 = arith.addf %665, %721 : vector<1x256xf32>
    %c35_88 = arith.constant 35 : index
    %723 = memref.load %arg1[%c35_88] : memref<81xf32, #tpu.memory_space<smem>>
    %724 = vector.broadcast %723 : f32 to vector<1x256xf32>
    %725 = arith.mulf %724, %718 : vector<1x256xf32>
    %726 = arith.addf %669, %725 : vector<1x256xf32>
    %c62_89 = arith.constant 62 : index
    %727 = memref.load %arg1[%c62_89] : memref<81xf32, #tpu.memory_space<smem>>
    %728 = vector.broadcast %727 : f32 to vector<1x256xf32>
    %729 = arith.mulf %728, %718 : vector<1x256xf32>
    %730 = arith.addf %673, %729 : vector<1x256xf32>
    %731 = vector.extract_strided_slice %678 {offsets = [4, 0], sizes = [1, 256], strides = [1, 1]} : vector<6x256xf32> to vector<1x256xf32>
    %c17_90 = arith.constant 17 : index
    %732 = memref.load %arg1[%c17_90] : memref<81xf32, #tpu.memory_space<smem>>
    %733 = vector.broadcast %732 : f32 to vector<1x256xf32>
    %734 = arith.mulf %733, %731 : vector<1x256xf32>
    %735 = arith.addf %722, %734 : vector<1x256xf32>
    %c44_91 = arith.constant 44 : index
    %736 = memref.load %arg1[%c44_91] : memref<81xf32, #tpu.memory_space<smem>>
    %737 = vector.broadcast %736 : f32 to vector<1x256xf32>
    %738 = arith.mulf %737, %731 : vector<1x256xf32>
    %739 = arith.addf %726, %738 : vector<1x256xf32>
    %c71_92 = arith.constant 71 : index
    %740 = memref.load %arg1[%c71_92] : memref<81xf32, #tpu.memory_space<smem>>
    %741 = vector.broadcast %740 : f32 to vector<1x256xf32>
    %742 = arith.mulf %741, %731 : vector<1x256xf32>
    %743 = arith.addf %730, %742 : vector<1x256xf32>
    %744 = vector.extract_strided_slice %678 {offsets = [5, 0], sizes = [1, 256], strides = [1, 1]} : vector<6x256xf32> to vector<1x256xf32>
    %c26_93 = arith.constant 26 : index
    %745 = memref.load %arg1[%c26_93] : memref<81xf32, #tpu.memory_space<smem>>
    %746 = vector.broadcast %745 : f32 to vector<1x256xf32>
    %747 = arith.mulf %746, %744 : vector<1x256xf32>
    %748 = arith.addf %735, %747 : vector<1x256xf32>
    %c53_94 = arith.constant 53 : index
    %749 = memref.load %arg1[%c53_94] : memref<81xf32, #tpu.memory_space<smem>>
    %750 = vector.broadcast %749 : f32 to vector<1x256xf32>
    %751 = arith.mulf %750, %744 : vector<1x256xf32>
    %752 = arith.addf %739, %751 : vector<1x256xf32>
    %c80_95 = arith.constant 80 : index
    %753 = memref.load %arg1[%c80_95] : memref<81xf32, #tpu.memory_space<smem>>
    %754 = vector.broadcast %753 : f32 to vector<1x256xf32>
    %755 = arith.mulf %754, %744 : vector<1x256xf32>
    %756 = arith.addf %743, %755 : vector<1x256xf32>
    %757 = tpu.concatenate %709, %713, %717, %748, %752, %756 in 0 : vector<1x256xf32>, vector<1x256xf32>, vector<1x256xf32>, vector<1x256xf32>, vector<1x256xf32>, vector<1x256xf32> -> vector<6x256xf32>
    %cst_96 = arith.constant 0x7FC00000 : f32
    %758 = vector.broadcast %cst_96 : f32 to vector<6x256xf32>
    %759 = arith.maximumf %757, %758 : vector<6x256xf32>
    %cst_97 = arith.constant 7.343750e-01 : f32
    %760 = vector.broadcast %cst_97 : f32 to vector<6x256xf32>
    %761 = arith.minimumf %759, %760 : vector<6x256xf32>
    %c0_98 = arith.constant 0 : index
    %c0_99 = arith.constant 0 : index
    %762 = vector.load %arg3[%c0_98, %c0_99] : memref<6x256xf32, #tpu.memory_space<vmem>>, vector<6x256xf32>
    tpu.vector_store %arg3[%c0_98, %c0_99], %761 {strides = array<i32>} : memref<6x256xf32, #tpu.memory_space<vmem>>, vector<6x256xf32>,
    return
  }
}

</mosaic_0001>

<bundles_post_ra>
// kernel: conv_clamp.1
= control target key start
LH: loop header
LB: loop body
LE: loop exit
PB: predicated region body
PF: predicated region fallthrough
CT: control target
= control target key end

     0   :  { %s2422_s0 = inlined_call_operand.vmem [shape: f32[6,256], index: 0, kind: input, shape index: {}]   ;;  %s2423_s1 = inlined_call_operand.vmem [shape: f32[81], index: 1, kind: input, shape index: {}]   ;;  %s2424_s2 = inlined_call_operand.vmem [shape: f32[3], index: 2, kind: input, shape index: {}]   ;;  %s2425_s3 = inlined_call_operand.vmem [shape: f32[6,256], index: 3, kind: output, shape index: {}]  }
   0x1   :  { %2451 = sst [smem:[#allocation19_spill]] %s2425_s3 }
   0x2   :  { %8 = vsyncpa [#allocation3], 0  ;;  %s18_s14 = sshll.u32 %s2423_s1, 4  ;;  %s19_s14 = int_to_ptr.vmem [resolvable:$true] %s18_s14 }
   0x3   :  { %9 = vsyncpa [#allocation5], 0  ;;  %s28_s17 = sshll.u32 %s2424_s2, 4  ;;  %s1305_s18 = scalar_lea.vmem %s19_s14, 16  ;;  %s29_s17 = int_to_ptr.vmem [resolvable:$true] %s28_s17 }
   0x4   :  { %p1306_p0 = scmp.ne.s32.totalorder %s19_s14, %s1305_s18  ;;  %p1310_p1 = scmp.lt.s32.totalorder %s19_s14, %s19_s14 }
   0x5   :  { %p1311_p2 = scmp.lt.s32.totalorder %s1305_s18, %s1305_s18 }
   0x7   :  { %p1312_p3 = por %p1311_p2, %p1310_p1 }
   0x9   :  { %p1313_p4 = pnand %p1312_p3, %p1306_p0 }
   0xb   :  { %1316 = shalt.err (!%p1313_p4)
}
   0xc   :  { %s1333_s19 = smov [#allocation2]   ;;  %s1317_s20 = scalar_lea.vmem %s29_s17, 16 }
   0xd   :  { %21 = dma.vmem_to_smem %s19_s14, 16, %s1333_s19, [#allocation3]  }
   0xe   :  { %p1318_p5 = scmp.ne.s32.totalorder %s29_s17, %s1317_s20  ;;  %p1322_p6 = scmp.lt.s32.totalorder %s29_s17, %s29_s17 }
   0xf   :  { %p1323_p7 = scmp.lt.s32.totalorder %s1317_s20, %s1317_s20 }
  0x11   :  { %p1324_p8 = por %p1323_p7, %p1322_p6 }
  0x13   :  { %p1325_p9 = pnand %p1324_p8, %p1318_p5 }
  0x15   :  { %1328 = shalt.err (!%p1325_p9)
}
  0x16   :  { %s1334_s1 = smov [#allocation4]  }
  0x17   :  { %31 = dma.vmem_to_smem %s29_s17, 16, %s1334_s1, [#allocation5]  }
  0x18   :  { %1329 = dma.done.wait [#allocation3], 16  }
  0x19   :  { %1330 = vsyncadd [#allocation3], 4294967280 }
  0x1a   :  { %1331 = dma.done.wait [#allocation5], 16  }
  0x1b   :  { %1332 = vsyncadd [#allocation5], 4294967280 }
  0x1c   :  { %38 = sfence }
  0x1d   :  { %v1373_v0 = vld [vmem:[%s2422_s0 + $0x8] sm:$0x3f]  ;;  %v1335_v1 = vmov 0.0   ;;  %s1336_s22 = smov 17   ;;  %s1222_s23 = sld [smem:[#allocation2 + $0x1]]  ;;  %vm69_vm1 = vcmask 138240  }
  0x1e   :  { %63 = vrot.lane.b32.xlu0 %v1335_v1, %s1336_s22  ;;  %67 = vrot.lane.b32.xlu1 %v1373_v0, %s1336_s22  ;;  %v1380_v2 = vld [vmem:[%s2422_s0] sm:$0x3f]  ;;  %s1223_s26 = sld [smem:[#allocation2 + $0x1c]]  ;;  %s1224_s27 = sld [smem:[#allocation2 + $0x37]]  ;;  %vm180_vm3 = vcmask 130048   ;;  %vm375_vm4 = vcmask 121856  }
  0x1f   :  { %s1225_s28 = sld [smem:[#allocation2 + $0xa]]  ;;  %s1337_s29 = smov 16   ;;  %vm478_vm7 = vcmask 7168   ;;  %vm671_vm8 = vcmask 1039360   ;;  %vm774_vm9 = vcmask 924672   ;;  %vm885_vm10 = vcmask 916480  }
  0x20   :  { %s1226_s0 = sld [smem:[#allocation2 + $0x25]]  ;;  %s1227_s30 = sld [smem:[#allocation2 + $0x40]]  ;;  %vm1076_vm11 = vcmask 908288   ;;  %vm1185_vm12 = vcmask 1040384   ;;  %vm1188_vm13 = vcmask 1041408   ;;  %vm1191_vm14 = vcmask 1042432  }
  0x21   :  { %s1229_s4 = sld [smem:[#allocation2 + $0x2e]]  ;;  %s1230_s5 = sld [smem:[#allocation2 + $0x49]]  ;;  %vm1194_vm15 = vcmask 1043456  }
  0x22   :  { %65 = vrot.lane.b32.xlu0 %v1380_v2, %s1336_s22  ;;  %s1338_s6 = smov 15   ;;  %s1228_s7 = sld [smem:[#allocation2 + $0x13]] }
  0x23   :  { %v167_v3 = vstv %s1222_s23  ;;  %s1339_s8 = smov 1   ;;  %s1277_s9 = sld [smem:[#allocation2 + $0x22]] }
  0x24   :  { %v168_v4 = vmul.f32 0.0, %v167_v3  ;;  %v169_v5 = vmul.f32 %v167_v3, %v1380_v2  ;;  %v188_v6 = vstv %s1223_s26  ;;  %v170_v7 = vmul.f32 %v167_v3, %v1373_v0  ;;  %s1340_s10 = smov 127   ;;  %s1278_s11 = sld [smem:[#allocation2 + $0x3d]] }
  0x25   :  { %v189_v8 = vmul.f32 0.0, %v188_v6  ;;  %v190_v9 = vmul.f32 %v188_v6, %v1380_v2  ;;  %v191_v10 = vmul.f32 %v188_v6, %v1373_v0  ;;  %v208_v11 = vstv %s1224_s27  ;;  %s1341_s12 = smov 113   ;;  %s1276_s13 = sld [smem:[#allocation2 + $0x7]] }
  0x26   :  { %174 = vrot.lane.b32.xlu1 %v168_v4, %s1337_s29  ;;  %176 = vrot.lane.b32.xlu0 %v169_v5, %s1337_s29  ;;  %v228_v12 = vstv %s1225_s28  ;;  %v209_v13 = vmul.f32 0.0, %v208_v11  ;;  %v210_v14 = vmul.f32 %v208_v11, %v1380_v2  ;;  %v251_v16 = vstv %s1226_s0  ;;  %s1342_s14 = smov 112   ;;  %s1280_s15 = sld [smem:[#allocation2 + $0x2b]] }
  0x27   :  { %v229_v15 = vmul.f32 0.0, %v228_v12  ;;  %v211_v17 = vmul.f32 %v208_v11, %v1373_v0  ;;  %v230_v19 = vmul.f32 %v228_v12, %v1380_v2  ;;  %v252_v20 = vmul.f32 0.0, %v251_v16  ;;  %s1281_s16 = sld [smem:[#allocation2 + $0x46]]  ;;  %s1279_s17 = sld [smem:[#allocation2 + $0x10]] }
  0x28   :  { %v253_v23 = vmul.f32 %v251_v16, %v1380_v2  ;;  %v254_v24 = vmul.f32 %v251_v16, %v1373_v0  ;;  %v274_v25 = vstv %s1227_s30  ;;  %v320_v34 = vstv %s1229_s4  ;;  %s1283_s18 = sld [smem:[#allocation2 + $0x34]]  ;;  %s1460_s19 = sld [smem:[#allocation4]] }
  0x29   :  { %v235_v18 = vrot.slane %v229_v15, 1  ;;  %v236_v21 = vrot.slane %v230_v19, 1  ;;  %v258_v22 = vrot.slane %v252_v20, 1  ;;  %v275_v28 = vmul.f32 0.0, %v274_v25  ;;  %s1465_s20 = sld [smem:[#allocation2]]  ;;  %s1467_s1 = sld [smem:[#allocation2 + $0x9]] }
  0x2a   :  { %178 = vrot.lane.b32.xlu1 %v170_v7, %s1337_s29  ;;  %195 = vrot.lane.b32.xlu0 %v189_v8, %s1337_s29  ;;  %v259_v26 = vrot.slane %v253_v23, 1  ;;  %v260_v27 = vrot.slane %v254_v24, 1  ;;  %v276_v29 = vmul.f32 %v274_v25, %v1380_v2  ;;  %v277_v32 = vmul.f32 %v274_v25, %v1373_v0  ;;  %s1472_s2 = sld [smem:[#allocation2 + $0x12]]  ;;  %s1474_s21 = sld [smem:[#allocation4 + $0x1]] }
  0x2b   :  { %v281_v30 = vrot.slane %v275_v28, 1  ;;  %v231_v35 = vmul.f32 %v228_v12, %v1373_v0  ;;  %v321_v36 = vmul.f32 0.0, %v320_v34  ;;  %v322_v39 = vmul.f32 %v320_v34, %v1380_v2  ;;  %s1476_s22 = sld [smem:[#allocation2 + $0x4f]]  ;;  %s1478_s23 = sld [smem:[#allocation2 + $0x1b]] }
  0x2c   :  { %v282_v31 = vrot.slane %v276_v29, 1  ;;  %v283_v33 = vrot.slane %v277_v32, 1  ;;  %v323_v40 = vmul.f32 %v320_v34, %v1373_v0  ;;  %v343_v41 = vstv %s1230_s5  ;;  %s1480_s24 = sld [smem:[#allocation2 + $0x24]]  ;;  %s1484_s25 = sld [smem:[#allocation2 + $0x2d]] }
  0x2d   :  { %v237_v37 = vrot.slane %v231_v35, 1  ;;  %v327_v38 = vrot.slane %v321_v36, 2  ;;  %v328_v42 = vrot.slane %v322_v39, 2  ;;  %v344_v44 = vmul.f32 0.0, %v343_v41  ;;  %s1486_s26 = sld [smem:[#allocation4 + $0x2]]  ;;  %s1490_s27 = sld [smem:[#allocation2 + $0x36]] }
  0x2e   :  { %197 = vrot.lane.b32.xlu1 %v190_v9, %s1337_s29  ;;  %199 = vrot.lane.b32.xlu0 %v191_v10, %s1337_s29  ;;  %v329_v43 = vrot.slane %v323_v40, 2  ;;  %v345_v45 = vmul.f32 %v343_v41, %v1380_v2  ;;  %v297_v46 = vstv %s1228_s7  ;;  %v346_v49 = vmul.f32 %v343_v41, %v1373_v0  ;;  %s1492_s28 = sld [smem:[#allocation2 + $0x19]]  ;;  %s1496_s0 = sld [smem:[#allocation2 + $0x48]] }
  0x2f   :  { %v350_v47 = vrot.slane %v344_v44, 2  ;;  %v298_v50 = vmul.f32 0.0, %v297_v46  ;;  %v299_v53 = vmul.f32 %v297_v46, %v1380_v2  ;;  %v300_v54 = vmul.f32 %v297_v46, %v1373_v0  ;;  %s1343_s30 = smov 111   ;;  %s1641_s4 = sld [smem:[#allocation2 + $0x1d]] }
  0x30   :  { %v351_v48 = vrot.slane %v345_v45, 2  ;;  %v352_v51 = vrot.slane %v346_v49, 2  ;;  %v893_v57 = vstv %s1277_s9  ;;  %v913_v61 = vstv %s1278_s11  ;;  %s1647_s5 = sld [smem:[#allocation2 + $0x26]]  ;;  %s1651_s7 = sld [smem:[#allocation2 + $0x38]] }
  0x31   :  { %v304_v52 = vrot.slane %v298_v50, 2  ;;  %v305_v55 = vrot.slane %v299_v53, 2  ;;  %v306_v56 = vrot.slane %v300_v54, 2  ;;  %v894_v58 = vmul.f32 %v893_v57, %v1380_v2  ;;  %s1655_s9 = sld [smem:[#allocation2 + $0x4a]]  ;;  %s1660_s11 = sld [smem:[#allocation2 + $0xb]] }
  0x32   :  { %215 = vrot.lane.b32.xlu1 %v209_v13, %s1337_s29  ;;  %217 = vrot.lane.b32.xlu0 %v210_v14, %s1337_s29  ;;  %v895_v59 = vmul.f32 %v893_v57, %v1373_v0  ;;  %v896_v60 = vmul.f32 0.0, %v893_v57  ;;  %v914_v62 = vmul.f32 %v913_v61, %v1380_v2  ;;  %v915_v63 = vmul.f32 %v913_v61, %v1373_v0  ;;  %s1747_s3 = sld [smem:[#allocation2 + $0x4]] }
  0x33   :  { %v872_v3 = vstv %s1276_s13  ;;  %v916_v4 = vmul.f32 0.0, %v913_v61  ;;  %v956_v6 = vstv %s1280_s15  ;;  %v41_v7 = vlaneseq  ;;  %s1666_s13 = sld [smem:[#allocation2 + $0x3]]  ;;  %s1670_s15 = sld [smem:[#allocation2 + $0x39]] }
  0x34   :  { %v873_v5 = vmul.f32 %v872_v3, %v1380_v2  ;;  %v874_v8 = vmul.f32 %v872_v3, %v1373_v0  ;;  %v875_v9 = vmul.f32 0.0, %v872_v3  ;;  %v957_v10 = vmul.f32 %v956_v6, %v1380_v2 }
  0x35   :  { %v958_v11 = vmul.f32 %v956_v6, %v1373_v0  ;;  %v979_v12 = vstv %s1281_s16  ;;  %v1455_v13 = vand.u32 127, %v41_v7  ;;  %v959_v16 = vmul.f32 0.0, %v956_v6  ;;  %s1672_s16 = sld [smem:[#allocation2 + $0x28]] }
  0x36   :  { %219 = vrot.lane.b32.xlu1 %v211_v17, %s1337_s29  ;;  %238 = vrot.lane.b32.xlu0 %v235_v18, %s1337_s29  ;;  %v963_v14 = vrot.slane %v957_v10, 1  ;;  %v980_v17 = vmul.f32 %v979_v12, %v1380_v2  ;;  %v933_v25 = vstv %s1279_s17  ;;  %v1025_v28 = vstv %s1283_s18  ;;  %s1676_s17 = sld [smem:[#allocation2 + $0xc]]  ;;  %s1678_s18 = sld [smem:[#allocation2 + $0x31]] }
  0x37   :  { %v964_v15 = vrot.slane %v958_v11, 1  ;;  %v1463_v18 = vadd.s32 128, %v1455_v13  ;;  %v965_v19 = vrot.slane %v959_v16, 1  ;;  %v44_v23 = vand.u32 15, %v1455_v13 }
  0x38   :  { %v986_v20 = vrot.slane %v980_v17, 1  ;;  %v934_v29 = vmul.f32 %v933_v25, %v1380_v2  ;;  %v51_v35 = vstv %s1460_s19  ;;  %v77_v36 = vstv %s1465_s20  ;;  %s1681_s19 = sld [smem:[#allocation2 + $0x27]]  ;;  %s1683_s20 = sld [smem:[#allocation2 + $0x42]] }
  0x39   :  { %v45_v24 = vand.u32 15, %v1463_v18  ;;  %vm1506_vm0 = vcmp.ge.s32.totalorder %v44_v23, 1  ;;  %v95_v39 = vstv %s1467_s1  ;;  %v131_v40 = vstv %s1472_s2  ;;  %2456 = sst [smem:[#allocation8_spill]] %s1666_s13  ;;  %s1687_s1 = sld [smem:[#allocation2 + $0x1f]] }
  0x3a   :  { %240 = vrot.lane.b32.xlu1 %v236_v21, %s1337_s29  ;;  %261 = vrot.lane.b32.xlu0 %v258_v22, %s1337_s29  ;;  %v981_v21 = vmul.f32 %v979_v12, %v1373_v0  ;;  %v982_v22 = vmul.f32 0.0, %v979_v12  ;;  %v1528_v41 = vmul.f32 0.0, %v1025_v28  ;;  %v53_v46 = vstv %s1474_s21  ;;  %s1689_s2 = sld [smem:[#allocation2 + $0x43]]  ;;  %s1691_s21 = sld [smem:[#allocation2 + $0x15]] }
  0x3b   :  { %vm1517_vm2 = vcmp.ge.s32.totalorder %v45_v24, 1  ;;  %v83_v49 = vstv %s1478_s23  ;;  %v107_v50 = vstv %s1480_s24  ;;  %v55_v54 = vstv %s1486_s26  ;;  %s1699_s23 = sld [smem:[#allocation2 + $0x4b]]  ;;  %s1701_s24 = sld [smem:[#allocation2 + $0x3a]] }
  0x3c   :  { %v1034_v57 = vrot.slane %v1528_v41, 2  ;;  %2457 = sst [smem:[#allocation9_spill]] %s1676_s17  ;;  %s1708_s26 = sld [smem:[#allocation2 + $0x20]]  ;;  %vm1751_vm5 = vcmp.lt.s32.totalorder %v44_v23, 15  ;;  %vm1793_vm6 = vcmp.lt.s32.totalorder %v45_v24, 15 }
  0x3d   :  { %s1773_s17 = sld [smem:[#allocation2 + $0x3c]]  ;;  %s1775_s13 = sld [smem:[#allocation2 + $0x16]] }
  0x3e   :  { %263 = vrot.lane.b32.xlu1 %v259_v26, %s1337_s29  ;;  %265 = vrot.lane.b32.xlu0 %v260_v27, %s1337_s29  ;;  %v987_v26 = vrot.slane %v981_v21, 1  ;;  %v988_v27 = vrot.slane %v982_v22, 1 }
  0x40   :  { %2458 = sst [smem:[#allocation10_spill]] %s1691_s21  ;;  %s1787_s21 = sld [smem:[#allocation2 + $0x45]] }
  0x42   :  { %284 = vrot.lane.b32.xlu1 %v281_v30, %s1337_s29  ;;  %286 = vrot.lane.b32.xlu0 %v282_v31, %s1337_s29  ;;  %v1500_v30 = vmul.f32 %v933_v25, %v1373_v0  ;;  %v1502_v31 = vmul.f32 0.0, %v933_v25 }
  0x44   :  { %v941_v44 = vrot.slane %v1500_v30, 1  ;;  %v942_v45 = vrot.slane %v1502_v31, 1 }
  0x46   :  { %288 = vrot.lane.b32.xlu1 %v283_v33, %s1337_s29  ;;  %369 = vrot.lane.b32.xlu0 %v1335_v1, %s1338_s6  ;;  %v1511_v33 = vmul.f32 %v1025_v28, %v1380_v2  ;;  %2466 = sst [smem:[#allocation16_spill]] %s1787_s21 }
  0x47   :  { %s1924_s21 = sld [smem:[#allocation2 + $0x50]] }
  0x4a   :  { %371 = vrot.lane.b32.xlu1 %v1380_v2, %s1338_s6  ;;  %373 = vrot.lane.b32.xlu0 %v1373_v0, %s1338_s6  ;;  %s1649_s6 = sld [smem:[#allocation2 + $0x2f]] }
  0x4e   :  { %242 = vrot.lane.b32.xlu1 %v237_v37, %s1337_s29  ;;  %330 = vrot.lane.b32.xlu0 %v327_v38, %s1337_s29  ;;  %v1524_v37 = vmul.f32 %v1025_v28, %v1373_v0 }
  0x52   :  { %332 = vrot.lane.b32.xlu1 %v328_v42, %s1337_s29  ;;  %334 = vrot.lane.b32.xlu0 %v329_v43, %s1337_s29  ;;  %v1048_v42 = vstv %s1476_s22  ;;  %v940_v43 = vrot.slane %v934_v29, 1  ;;  %s1693_s22 = sld [smem:[#allocation2 + $0x30]] }
  0x53   :  { %v1542_v53 = vmul.f32 %v1048_v42, %v1380_v2  ;;  %v1557_v3 = vmul.f32 0.0, %v1048_v42 }
  0x55   :  { %v1055_v11 = vrot.slane %v1542_v53, 2 }
  0x56   :  { %353 = vrot.lane.b32.xlu1 %v350_v47, %s1337_s29  ;;  %355 = vrot.lane.b32.xlu0 %v351_v48, %s1337_s29  ;;  %v1032_v48 = vrot.slane %v1511_v33, 2  ;;  %v1057_v33 = vrot.slane %v1557_v3, 2 }
  0x58   :  { %v552_v23 = vstv %s1693_s22 }
  0x5a   :  { %357 = vrot.lane.b32.xlu1 %v352_v51, %s1337_s29  ;;  %307 = vrot.lane.b32.xlu0 %v304_v52, %s1337_s29  ;;  %v143_v51 = vstv %s1484_s25  ;;  %v1033_v52 = vrot.slane %v1524_v37, 2  ;;  %s1703_s25 = sld [smem:[#allocation2 + $0x4c]] }
  0x5e   :  { %309 = vrot.lane.b32.xlu1 %v305_v55, %s1337_s29  ;;  %311 = vrot.lane.b32.xlu0 %v306_v56, %s1337_s29  ;;  %s1494_s29 = sld [smem:[#allocation2 + $0x3f]]  ;;  %v1546_v55 = vstv %s1492_s28  ;;  %s1716_s28 = sld [smem:[#allocation2 + $0x32]] }
  0x5f   :  { %v1567_v6 = vmul.f32 %v1546_v55, %v1380_v2  ;;  %v1571_v7 = vmul.f32 %v1546_v55, %v1373_v0 }
  0x62   :  { %472 = vrot.lane.b32.xlu1 %v1335_v1, %s1339_s8  ;;  %474 = vrot.lane.b32.xlu0 %v1380_v2, %s1339_s8 }
  0x64   :  { %2460 = sst [smem:[#allocation12_spill]] %s1716_s28  ;;  %s1821_s28 = sld [smem:[#allocation2 + $0xe]] }
  0x66   :  { %476 = vrot.lane.b32.xlu1 %v1373_v0, %s1339_s8  ;;  %665 = vrot.lane.b32.xlu0 %v1380_v2, %s1340_s10  ;;  %s1653_s8 = sld [smem:[#allocation2 + $0x41]] }
  0x6a   :  { %667 = vrot.lane.b32.xlu1 %v1373_v0, %s1340_s10  ;;  %669 = vrot.lane.b32.xlu0 %v1335_v1, %s1340_s10  ;;  %s1657_s10 = sld [smem:[#allocation2 + $0x2]] }
  0x6e   :  { %768 = vrot.lane.b32.xlu1 %v1380_v2, %s1341_s12  ;;  %770 = vrot.lane.b32.xlu0 %v1373_v0, %s1341_s12 }
  0x72   :  { %772 = vrot.lane.b32.xlu1 %v1335_v1, %s1341_s12  ;;  %900 = vrot.lane.b32.xlu0 %v894_v58, %s1342_s14  ;;  %v89_v58 = vstv %s1490_s27  ;;  %s1662_s12 = sld [smem:[#allocation2 + $0x14]]  ;;  %s1710_s27 = sld [smem:[#allocation2 + $0x29]] }
  0x76   :  { %902 = vrot.lane.b32.xlu1 %v895_v59, %s1342_s14  ;;  %904 = vrot.lane.b32.xlu0 %v896_v60, %s1342_s14  ;;  %v119_v59 = vstv %s1494_s29  ;;  %v155_v60 = vstv %s1496_s0  ;;  %s1718_s29 = sld [smem:[#allocation2 + $0x21]]  ;;  %s1726_s0 = sld [smem:[#allocation2 + $0x2a]] }
  0x78   :  { %2459 = sst [smem:[#allocation11_spill]] %s1710_s27  ;;  %s1823_s27 = sld [smem:[#allocation2 + $0x17]] }
  0x7a   :  { %920 = vrot.lane.b32.xlu1 %v914_v62, %s1342_s14  ;;  %922 = vrot.lane.b32.xlu0 %v915_v63, %s1342_s14  ;;  %v1555_v63 = vmul.f32 %v1048_v42, %v1373_v0 }
  0x7c   :  { %2461 = sst [smem:[#allocation13_spill]] %s1718_s29  ;;  %s1849_s29 = sld [smem:[#allocation2 + $0x18]] }
  0x7d   :  { %2462 = sst [smem:[#allocation14_spill]] %s1726_s0  ;;  %s1839_s0 = sld [smem:[#allocation2 + $0xf]] }
  0x7e   :  { %924 = vrot.lane.b32.xlu1 %v916_v4, %s1342_s14  ;;  %879 = vrot.lane.b32.xlu0 %v873_v5, %s1342_s14  ;;  %2470 = sst [smem:[#allocation18_spill]] %s1823_s27  ;;  %s1922_s27 = sld [smem:[#allocation2 + $0x47]] }
  0x82   :  { %881 = vrot.lane.b32.xlu1 %v874_v8, %s1342_s14  ;;  %883 = vrot.lane.b32.xlu0 %v875_v9, %s1342_s14 }
  0x86   :  { %966 = vrot.lane.b32.xlu1 %v963_v14, %s1342_s14  ;;  %968 = vrot.lane.b32.xlu0 %v964_v15, %s1342_s14 }
  0x8a   :  { %970 = vrot.lane.b32.xlu1 %v965_v19, %s1342_s14  ;;  %989 = vrot.lane.b32.xlu0 %v986_v20, %s1342_s14 }
  0x8e   :  { %991 = vrot.lane.b32.xlu1 %v987_v26, %s1342_s14  ;;  %993 = vrot.lane.b32.xlu0 %v988_v27, %s1342_s14 }
  0x90   :  { %v64_v38 = vpop.permute.xlu0 %63  ;;  %v68_v47 = vpop.permute.xlu1 %67 }
  0x92   :  { %1070 = vrot.lane.b32.xlu1 %v1380_v2, %s1343_s30  ;;  %1072 = vrot.lane.b32.xlu0 %v1373_v0, %s1343_s30 }
  0x94   :  { %v66_v56 = vpop.permute.xlu0 %65 }
  0x95   :  { %v70_v61 = vsel %vm69_vm1, %v64_v38, %v66_v56  ;;  %v71_v62 = vsel %vm69_vm1, %v66_v56, %v68_v47  ;;  %v1056_v47 = vrot.slane %v1555_v63, 2 }
  0x96   :  { %v74_v4 = vsel %vm1506_vm0, %v70_v61, 0.0  ;;  %v1563_v5 = vsel %vm1517_vm2, %v71_v62, 0.0  ;;  %1074 = vrot.lane.b32.xlu1 %v1335_v1, %s1343_s30  ;;  %943 = vrot.lane.b32.xlu0 %v940_v43, %s1342_s14  ;;  %s1728_s30 = sld [smem:[#allocation2 + $0x33]] }
  0x97   :  { %v78_v8 = vmul.f32 %v77_v36, %v74_v4  ;;  %v96_v9 = vmul.f32 %v95_v39, %v74_v4  ;;  %v132_v10 = vmul.f32 %v131_v40, %v74_v4  ;;  %v79_v12 = vmul.f32 %v77_v36, %v1563_v5 }
  0x98   :  { %v97_v14 = vmul.f32 %v95_v39, %v1563_v5  ;;  %v133_v15 = vmul.f32 %v131_v40, %v1563_v5  ;;  %v84_v16 = vmul.f32 %v83_v49, %v74_v4  ;;  %v175_v17 = vpop.permute.xlu1 %174  ;;  %v177_v1 = vpop.permute.xlu0 %176  ;;  %v108_v22 = vmul.f32 %v107_v50, %v74_v4 }
  0x99   :  { %v80_v19 = vadd.f32 %v78_v8, %v51_v35  ;;  %v100_v20 = vrot.slane %v96_v9, 1  ;;  %v136_v21 = vrot.slane %v132_v10, 2  ;;  %v181_v25 = vsel %vm180_vm3, %v175_v17, %v177_v1 }
  0x9a   :  { %v81_v26 = vadd.f32 %v79_v12, %v51_v35  ;;  %v101_v27 = vrot.slane %v97_v14, 1  ;;  %v137_v28 = vrot.slane %v133_v15, 2  ;;  %945 = vrot.lane.b32.xlu1 %v941_v44, %s1342_s14  ;;  %947 = vrot.lane.b32.xlu0 %v942_v45, %s1342_s14  ;;  %v86_v30 = vadd.f32 %v84_v16, %v53_v46 }
  0x9b   :  { %v104_v29 = vadd.f32 %v100_v20, %v80_v19  ;;  %v112_v31 = vrot.slane %v108_v22, 1  ;;  %v144_v36 = vmul.f32 %v143_v51, %v74_v4  ;;  %v85_v38 = vmul.f32 %v83_v49, %v1563_v5 }
  0x9c   :  { %v105_v37 = vadd.f32 %v101_v27, %v81_v26  ;;  %v109_v39 = vmul.f32 %v107_v50, %v1563_v5  ;;  %v145_v35 = vmul.f32 %v143_v51, %v1563_v5  ;;  %v179_v42 = vpop.permute.xlu1 %178  ;;  %v196_v43 = vpop.permute.xlu0 %195  ;;  %v90_v45 = vmul.f32 %v89_v58, %v74_v4  ;;  %2463 = sst [smem:[#allocation15_spill]] %s1728_s30  ;;  %s1837_s30 = sld [smem:[#allocation2 + $0x6]] }
  0x9d   :  { %v140_v40 = vadd.f32 %v136_v21, %v104_v29  ;;  %v116_v44 = vadd.f32 %v112_v31, %v86_v30  ;;  %v182_v56 = vsel %vm180_vm3, %v177_v1, %v179_v42  ;;  %v87_v49 = vadd.f32 %v85_v38, %v53_v46 }
  0x9e   :  { %v141_v53 = vadd.f32 %v137_v28, %v105_v37  ;;  %v113_v50 = vrot.slane %v109_v39, 1  ;;  %1035 = vrot.lane.b32.xlu1 %v1032_v48, %s1342_s14  ;;  %1037 = vrot.lane.b32.xlu0 %v1033_v52, %s1342_s14  ;;  %v148_v61 = vrot.slane %v144_v36, 2  ;;  %v149_v62 = vrot.slane %v145_v35, 2 }
  0x9f   :  { %v185_v51 = vadd.f32 %v181_v25, %v140_v40  ;;  %v92_v8 = vadd.f32 %v90_v45, %v55_v54  ;;  %v120_v46 = vmul.f32 %v119_v59, %v74_v4  ;;  %v156_v10 = vmul.f32 %v155_v60, %v74_v4 }
  0xa0   :  { %v1599_v63 = vadd.f32 %v182_v56, %v141_v53  ;;  %v117_v9 = vadd.f32 %v113_v50, %v87_v49  ;;  %v152_v12 = vadd.f32 %v148_v61, %v116_v44  ;;  %v198_v14 = vpop.permute.xlu1 %197  ;;  %v200_v15 = vpop.permute.xlu0 %199  ;;  %v91_v48 = vmul.f32 %v89_v58, %v1563_v5 }
  0xa1   :  { %v121_v52 = vmul.f32 %v119_v59, %v1563_v5  ;;  %v201_v16 = vsel %vm180_vm3, %v196_v43, %v198_v14  ;;  %v202_v19 = vsel %vm180_vm3, %v198_v14, %v200_v15  ;;  %v124_v20 = vrot.slane %v120_v46, 1 }
  0xa2   :  { %v153_v17 = vadd.f32 %v149_v62, %v117_v9  ;;  %v205_v21 = vadd.f32 %v201_v16, %v152_v12  ;;  %1039 = vrot.lane.b32.xlu1 %v1034_v57, %s1342_s14  ;;  %1058 = vrot.lane.b32.xlu0 %v1055_v11, %s1342_s14  ;;  %v93_v3 = vadd.f32 %v91_v48, %v55_v54  ;;  %v160_v22 = vrot.slane %v156_v10, 2 }
  0xa3   :  { %v125_v4 = vrot.slane %v121_v52, 1  ;;  %v157_v58 = vmul.f32 %v155_v60, %v1563_v5  ;;  %v128_v1 = vadd.f32 %v124_v20, %v92_v8  ;;  %v1009_v54 = vrot.slane %v1567_v6, 2 }
  0xa4   :  { %v206_v59 = vadd.f32 %v202_v19, %v153_v17  ;;  %v216_v25 = vpop.permute.xlu1 %215  ;;  %v218_v26 = vpop.permute.xlu0 %217  ;;  %v1010_v57 = vrot.slane %v1571_v7, 2  ;;  %v1005_v60 = vmul.f32 0.0, %v1546_v55  ;;  %v389_v46 = vstv %s1641_s4  ;;  %s2002_s4 = sld [smem:[#allocation2 + $0x8]] }
  0xa5   :  { %v129_v27 = vadd.f32 %v125_v4, %v93_v3  ;;  %v164_v28 = vadd.f32 %v160_v22, %v128_v1  ;;  %v221_v29 = vsel %vm180_vm3, %v216_v25, %v218_v26  ;;  %v161_v41 = vrot.slane %v157_v58, 2 }
  0xa6   :  { %1060 = vrot.lane.b32.xlu1 %v1056_v47, %s1342_s14  ;;  %1062 = vrot.lane.b32.xlu0 %v1057_v33, %s1342_s14  ;;  %v1011_v38 = vrot.slane %v1005_v60, 2  ;;  %v413_v10 = vstv %s1647_s5  ;;  %v449_v12 = vstv %s1649_s6  ;;  %s2014_s5 = sld [smem:[#allocation2 + $0x11]]  ;;  %s2032_s6 = sld [smem:[#allocation2 + $0x1a]] }
  0xa7   :  { %v225_v5 = vadd.f32 %v221_v29, %v164_v28  ;;  %v165_v11 = vadd.f32 %v161_v41, %v129_v27  ;;  %v395_v14 = vstv %s1651_s7  ;;  %v425_v15 = vstv %s1653_s8  ;;  %s2479_s7 = sld [smem:[#allocation8_spill]]  ;;  %s2480_s8 = sld [smem:[#allocation9_spill]] }
  0xa8   :  { %v220_v30 = vpop.permute.xlu1 %219  ;;  %v239_v31 = vpop.permute.xlu0 %238  ;;  %v2449_v33 = vstv %s1655_s9  ;;  %v606_v48 = vstv %s1672_s16  ;;  %s1735_s16 = sld [smem:[#allocation2 + $0x3b]]  ;;  %v582_v22 = vstv %s1687_s1  ;;  %v516_v28 = vstv %s1681_s19  ;;  %s1761_s1 = sld [smem:[#allocation2 + $0x4d]] }
  0xa9   :  { %v222_v36 = vsel %vm180_vm3, %v218_v26, %v220_v30  ;;  %v1742_v25 = vmul.f32 %v606_v48, %v1380_v2  ;;  %v618_v26 = vstv %s1689_s2  ;;  %v2450_v29 = vstv %s1683_s20  ;;  %s1763_s2 = sld [smem:[#allocation2 + $0xd]]  ;;  %s2519_s19 = sld [smem:[#allocation16_spill]] }
  0xaa   :  { %v226_v37 = vadd.f32 %v222_v36, %v165_v11  ;;  %1012 = vrot.lane.b32.xlu1 %v1009_v54, %s1342_s14  ;;  %1014 = vrot.lane.b32.xlu0 %v1010_v57, %s1342_s14  ;;  %v1778_v11 = vmul.f32 %v582_v22, %v1380_v2  ;;  %v1781_v30 = vmul.f32 %v606_v48, %v1373_v0  ;;  %v654_v36 = vstv %s1703_s25  ;;  %s1811_s25 = sld [smem:[#allocation2 + $0x5]] }
  0xac   :  { %v1632_v39 = vpop.permute.xlu1 %240  ;;  %v262_v35 = vpop.permute.xlu0 %261 }
  0xad   :  { %v244_v6 = vsel %vm180_vm3, %v239_v31, %v1632_v39  ;;  %v1784_v31 = vmul.f32 %v618_v26, %v1380_v2 }
  0xae   :  { %v1636_v7 = vadd.f32 %v244_v6, %v185_v51  ;;  %1016 = vrot.lane.b32.xlu1 %v1011_v38, %s1342_s14  ;;  %s1668_s14 = sld [smem:[#allocation2 + $0x1e]] }
  0xb0   :  { %v264_v55 = vpop.permute.xlu1 %263  ;;  %v266_v40 = vpop.permute.xlu0 %265 }
  0xb1   :  { %v267_v42 = vsel %vm180_vm3, %v262_v35, %v264_v55  ;;  %v268_v43 = vsel %vm180_vm3, %v264_v55, %v266_v40  ;;  %v594_v40 = vstv %s1763_s2  ;;  %s1902_s2 = sld [smem:[#allocation2 + $0x35]] }
  0xb2   :  { %v1643_v44 = vadd.f32 %v267_v42, %v205_v21  ;;  %v1645_v45 = vadd.f32 %v268_v43, %v206_v59  ;;  %v642_v21 = vstv %s1678_s18  ;;  %v498_v59 = vstv %s1670_s15  ;;  %s1745_s18 = sld [smem:[#allocation2 + $0x44]]  ;;  %s2505_s15 = sld [smem:[#allocation15_spill]] }
  0xb3   :  { %v1759_v41 = vmul.f32 %v642_v21, %v1380_v2  ;;  %v1801_v6 = vmul.f32 %v642_v21, %v1373_v0  ;;  %v1806_v42 = vmul.f32 %v582_v22, %v1373_v0  ;;  %v1829_v21 = vmul.f32 %v618_v26, %v1373_v0 }
  0xb4   :  { %v285_v47 = vpop.permute.xlu1 %284  ;;  %v287_v53 = vpop.permute.xlu0 %286  ;;  %v492_v58 = vstv %s1668_s14  ;;  %s2499_s14 = sld [smem:[#allocation14_spill]] }
  0xb5   :  { %v290_v56 = vsel %vm180_vm3, %v285_v47, %v287_v53  ;;  %v1876_v47 = vmul.f32 %v594_v40, %v1380_v2 }
  0xb6   :  { %v1664_v49 = vadd.f32 %v290_v56, %v225_v5  ;;  %v588_v5 = vstv %s1701_s24  ;;  %s1789_s24 = sld [smem:[#allocation2 + $0x4e]]  ;;  %v1834_v56 = vmul.f32 %v654_v36, %v1373_v0 }
  0xb7   :  { %v1809_v18 = vmul.f32 %v588_v5, %v1380_v2 }
  0xb8   :  { %v289_v50 = vpop.permute.xlu1 %288  ;;  %v1674_v51 = vpop.permute.xlu0 %369 }
  0xb9   :  { %v291_v61 = vsel %vm180_vm3, %v287_v53, %v289_v50  ;;  %v1819_v50 = vmul.f32 %v654_v36, %v1380_v2  ;;  %v576_v53 = vstv %s1747_s3  ;;  %s1886_s3 = sld [smem:[#allocation2 + $0x23]] }
  0xba   :  { %v1685_v62 = vadd.f32 %v291_v61, %v226_v37  ;;  %v1865_v48 = vmul.f32 %v576_v53, %v1380_v2 }
  0xbc   :  { %v1695_v8 = vpop.permute.xlu1 %371  ;;  %v1697_v9 = vpop.permute.xlu0 %373  ;;  %2467 = sst [smem:[#allocation17_spill]] %s1789_s24  ;;  %s1916_s24 = sld [smem:[#allocation2 + $0x3e]] }
  0xbd   :  { %v376_v26 = vsel %vm375_vm4, %v1674_v51, %v1695_v8  ;;  %v630_v51 = vstv %s1775_s13  ;;  %v377_v61 = vsel %vm375_vm4, %v1695_v8, %v1697_v9  ;;  %s1888_s13 = sld [smem:[#allocation2 + $0x2c]]  ;;  %s2529_s22 = sld [smem:[#allocation17_spill]] }
  0xc0   :  { %v243_v52 = vpop.permute.xlu1 %242  ;;  %v1720_v16 = vpop.permute.xlu0 %330 }
  0xc1   :  { %v245_v3 = vsel %vm180_vm3, %v1632_v39, %v243_v52  ;;  %v1846_v52 = vmul.f32 %v588_v5, %v1373_v0 }
  0xc2   :  { %v1738_v1 = vadd.f32 %v245_v3, %v1599_v63  ;;  %v2551_v37 = vstv %s1916_s24 }
  0xc4   :  { %v1765_v54 = vpop.permute.xlu1 %332  ;;  %v1767_v57 = vpop.permute.xlu0 %334 }
  0xc5   :  { %v336_v36 = vsel %vm180_vm3, %v1720_v16, %v1765_v54  ;;  %v1869_v16 = vsel %vm1751_vm5, %v376_v26, 0.0  ;;  %v337_v55 = vsel %vm180_vm3, %v1765_v54, %v1767_v57  ;;  %v1883_v26 = vmul.f32 %v630_v51, %v1380_v2 }
  0xc6   :  { %v340_v5 = vadd.f32 %v336_v36, %v1643_v44  ;;  %v1897_v36 = vmul.f32 %v594_v40, %v1373_v0  ;;  %v1900_v2 = vmul.f32 %v630_v51, %v1373_v0  ;;  %v1906_v54 = vsel %vm1793_vm6, %v377_v61, 0.0 }
  0xc7   :  { %v390_v57 = vmul.f32 %v389_v46, %v1869_v16  ;;  %v414_v44 = vmul.f32 %v413_v10, %v1869_v16  ;;  %v341_v51 = vadd.f32 %v337_v55, %v1645_v45  ;;  %v391_v45 = vmul.f32 %v389_v46, %v1906_v54 }
  0xc8   :  { %v354_v24 = vpop.permute.xlu1 %353  ;;  %v1813_v43 = vpop.permute.xlu0 %355  ;;  %v415_v55 = vmul.f32 %v413_v10, %v1906_v54  ;;  %v426_v10 = vmul.f32 %v425_v15, %v1869_v16 }
  0xc9   :  { %v359_v40 = vsel %vm180_vm3, %v354_v24, %v1813_v43  ;;  %v392_v38 = vadd.f32 %v390_v57, %v340_v5  ;;  %v1929_v24 = vmul.f32 %v576_v53, %v1373_v0  ;;  %v418_v63 = vrot.slane %v414_v44, 1 }
  0xca   :  { %v363_v39 = vadd.f32 %v359_v40, %v1664_v49  ;;  %v450_v0 = vmul.f32 %v449_v12, %v1869_v16  ;;  %v393_v13 = vadd.f32 %v391_v45, %v341_v51  ;;  %v396_v49 = vmul.f32 %v395_v14, %v1869_v16 }
  0xcb   :  { %v422_v40 = vadd.f32 %v418_v63, %v392_v38  ;;  %v419_v45 = vrot.slane %v415_v55, 1  ;;  %v462_v57 = vmul.f32 %v2449_v33, %v1869_v16  ;;  %v430_v46 = vrot.slane %v426_v10, 1 }
  0xcc   :  { %v1854_v22 = vpop.permute.xlu1 %357  ;;  %v1856_v35 = vpop.permute.xlu0 %307  ;;  %v398_v3 = vadd.f32 %v396_v49, %v363_v39  ;;  %v454_v19 = vrot.slane %v450_v0, 2  ;;  %v1102_v55 = vstv %s2014_s5 }
  0xcd   :  { %v360_v0 = vsel %vm180_vm3, %v1813_v43, %v1854_v22  ;;  %v466_v20 = vrot.slane %v462_v57, 2 }
  0xce   :  { %v458_v33 = vadd.f32 %v454_v19, %v422_v40  ;;  %v434_v17 = vadd.f32 %v430_v46, %v398_v3 }
  0xd0   :  { %v1890_v8 = vpop.permute.xlu1 %309  ;;  %v1892_v9 = vpop.permute.xlu0 %311 }
  0xd1   :  { %v314_v57 = vsel %vm180_vm3, %v1890_v8, %v1892_v9  ;;  %v2471_v9 = vstv %s1657_s10 }
  0xd4   :  { %v473_v61 = vpop.permute.xlu1 %472  ;;  %v475_v5 = vpop.permute.xlu0 %474 }
  0xd5   :  { %v479_v53 = vsel %vm478_vm7, %v473_v61, %v475_v5  ;;  %v451_v61 = vmul.f32 %v449_v12, %v1906_v54  ;;  %v2475_v12 = vstv %s1657_s10  ;;  %s2493_s10 = sld [smem:[#allocation11_spill]] }
  0xd6   :  { %v1952_v44 = vsel %vm1506_vm0, %v479_v53, 0.0  ;;  %v423_v53 = vadd.f32 %v419_v45, %v393_v13  ;;  %v313_v13 = vsel %vm180_vm3, %v1856_v35, %v1890_v8  ;;  %v470_v8 = vadd.f32 %v466_v20, %v434_v17 }
  0xd7   :  { %v493_v63 = vmul.f32 %v492_v58, %v1952_v44  ;;  %v517_v38 = vmul.f32 %v516_v28, %v1952_v44  ;;  %v455_v39 = vrot.slane %v451_v61, 2  ;;  %v2472_v61 = vstv %s1660_s11 }
  0xd8   :  { %v477_v4 = vpop.permute.xlu1 %476  ;;  %v1962_v60 = vpop.permute.xlu0 %665  ;;  %v402_v45 = vmul.f32 %v2472_v61, %v1869_v16  ;;  %v318_v61 = vadd.f32 %v314_v57, %v1738_v1  ;;  %v2477_v1 = vstv %s1699_s23 }
  0xd9   :  { %v480_v49 = vsel %vm478_vm7, %v475_v5, %v477_v4  ;;  %v397_v4 = vmul.f32 %v395_v14, %v1906_v54  ;;  %v495_v43 = vadd.f32 %v493_v63, %v458_v33  ;;  %v521_v3 = vrot.slane %v517_v38, 1 }
  0xda   :  { %v1983_v19 = vsel %vm1517_vm2, %v480_v49, 0.0  ;;  %v459_v22 = vadd.f32 %v455_v39, %v423_v53  ;;  %v364_v5 = vadd.f32 %v360_v0, %v1685_v62  ;;  %v317_v14 = vadd.f32 %v313_v13, %v1636_v7 }
  0xdb   :  { %v494_v35 = vmul.f32 %v492_v58, %v1983_v19  ;;  %v518_v46 = vmul.f32 %v516_v28, %v1983_v19  ;;  %v499_v33 = vmul.f32 %v498_v59, %v1952_v44  ;;  %v529_v58 = vmul.f32 %v2450_v29, %v1952_v44 }
  0xdc   :  { %v1985_v10 = vpop.permute.xlu1 %667  ;;  %v1987_v40 = vpop.permute.xlu0 %669  ;;  %v553_v62 = vmul.f32 %v552_v23, %v1952_v44  ;;  %v427_v28 = vmul.f32 %v425_v15, %v1906_v54  ;;  %v384_v7 = vmul.f32 %v2471_v9, %v1869_v16  ;;  %v554_v17 = vmul.f32 %v552_v23, %v1983_v19 }
  0xdd   :  { %v496_v53 = vadd.f32 %v494_v35, %v459_v22  ;;  %v522_v39 = vrot.slane %v518_v46, 1  ;;  %v525_v20 = vadd.f32 %v521_v3, %v495_v43  ;;  %v399_v15 = vadd.f32 %v397_v4, %v364_v5 }
  0xde   :  { %v2473_v0 = vstv %s1655_s9  ;;  %v2474_v13 = vstv %s1662_s12  ;;  %v386_v35 = vadd.f32 %v384_v7, %v317_v14  ;;  %v501_v22 = vadd.f32 %v499_v33, %v470_v8  ;;  %s2482_s9 = sld [smem:[#allocation10_spill]]  ;;  %s2497_s12 = sld [smem:[#allocation13_spill]] }
  0xdf   :  { %v463_v49 = vmul.f32 %v2473_v0, %v1906_v54  ;;  %v438_v9 = vmul.f32 %v2474_v13, %v1869_v16  ;;  %v533_v46 = vrot.slane %v529_v58, 1  ;;  %v557_v23 = vrot.slane %v553_v62, 2 }
  0xe0   :  { %v2025_v63 = vpop.permute.xlu1 %768  ;;  %v2027_v38 = vpop.permute.xlu0 %770  ;;  %v431_v43 = vrot.slane %v427_v28, 1  ;;  %v406_v3 = vrot.slane %v402_v45, 1  ;;  %v385_v4 = vmul.f32 %v2475_v12, %v1906_v54  ;;  %v2476_v5 = vstv %s1660_s11  ;;  %s2494_s11 = sld [smem:[#allocation12_spill]] }
  0xe1   :  { %v403_v0 = vmul.f32 %v2476_v5, %v1906_v54  ;;  %v565_v57 = vmul.f32 %v2477_v1, %v1952_v44  ;;  %v558_v14 = vrot.slane %v554_v17, 2  ;;  %v561_v33 = vadd.f32 %v557_v23, %v525_v20 }
  0xe2   :  { %v526_v58 = vadd.f32 %v522_v39, %v496_v53  ;;  %v435_v62 = vadd.f32 %v431_v43, %v399_v15  ;;  %v2478_v12 = vmov %v2474_v13  ;;  %v387_v28 = vadd.f32 %v385_v4, %v318_v61 }
  0xe3   :  { %v439_v8 = vmul.f32 %v2478_v12, %v1906_v54  ;;  %v1084_v7 = vstv %s2002_s4  ;;  %v410_v45 = vadd.f32 %v406_v3, %v386_v35  ;;  %v537_v5 = vadd.f32 %v533_v46, %v501_v22 }
  0xe4   :  { %v2047_v51 = vpop.permute.xlu1 %772  ;;  %v2049_v16 = vpop.permute.xlu0 %900  ;;  %v562_v13 = vadd.f32 %v558_v14, %v526_v58  ;;  %v467_v29 = vrot.slane %v463_v49, 2  ;;  %v407_v1 = vrot.slane %v403_v0, 1  ;;  %v500_v17 = vmul.f32 %v498_v59, %v1983_v19 }
  0xe5   :  { %v2481_v53 = vstv %s1683_s20  ;;  %v442_v15 = vrot.slane %v438_v9, 2  ;;  %v569_v61 = vrot.slane %v565_v57, 2  ;;  %v585_v35 = vadd.f32 %v1778_v11, %v561_v33  ;;  %s2526_s20 = sld [smem:[#allocation18_spill]] }
  0xe6   :  { %v530_v39 = vmul.f32 %v2481_v53, %v1983_v19  ;;  %v1138_v49 = vstv %s2032_s6  ;;  %v471_v22 = vadd.f32 %v467_v29, %v435_v62  ;;  %v443_v46 = vrot.slane %v439_v8, 2 }
  0xe7   :  { %v411_v23 = vadd.f32 %v407_v1, %v387_v28  ;;  %v586_v59 = vadd.f32 %v1806_v42, %v562_v13  ;;  %v446_v43 = vadd.f32 %v442_v15, %v410_v45  ;;  %v2483_v3 = vstv %s2479_s7 }
  0xe8   :  { %v2065_v20 = vpop.permute.xlu1 %902  ;;  %v2067_v54 = vpop.permute.xlu0 %904  ;;  %v487_v4 = vmul.f32 %v2483_v3, %v1952_v44  ;;  %v2484_v0 = vstv %s2480_s8  ;;  %v573_v9 = vadd.f32 %v569_v61, %v537_v5  ;;  %v2485_v57 = vstv %s2482_s9 }
  0xe9   :  { %v505_v14 = vmul.f32 %v2484_v0, %v1952_v44  ;;  %v541_v11 = vmul.f32 %v2485_v57, %v1952_v44  ;;  %v502_v33 = vadd.f32 %v500_v17, %v471_v22  ;;  %v534_v58 = vrot.slane %v530_v39, 1 }
  0xea   :  { %v2486_v29 = vstv %s1699_s23  ;;  %v2487_v8 = vmov %v2483_v3  ;;  %v672_v45 = vsel %vm671_vm8, %v1962_v60, %v1985_v10  ;;  %v2488_v13 = vrot.slane %v1742_v25, 1  ;;  %s2558_s23 = sld [smem:[#allocation19_spill]] }
  0xeb   :  { %v566_v62 = vmul.f32 %v2486_v29, %v1983_v19  ;;  %v488_v28 = vmul.f32 %v2487_v8, %v1983_v19  ;;  %v591_v44 = vadd.f32 %v1809_v18, %v573_v9  ;;  %v2489_v1 = vmov %v2484_v0 }
  0xec   :  { %v2084_v12 = vpop.permute.xlu1 %920  ;;  %v2086_v42 = vpop.permute.xlu0 %922  ;;  %v615_v5 = vadd.f32 %v2488_v13, %v585_v35  ;;  %v2100_v17 = vmul.f32 %v2489_v1, %v1983_v19  ;;  %v2490_v53 = vmov %v2485_v57  ;;  %v673_v15 = vsel %vm671_vm8, %v1985_v10, %v1987_v40 }
  0xed   :  { %v2105_v39 = vmul.f32 %v2490_v53, %v1983_v19  ;;  %v2491_v61 = vrot.slane %v1781_v30, 1  ;;  %v447_v22 = vadd.f32 %v443_v46, %v411_v23  ;;  %v489_v25 = vadd.f32 %v487_v4, %v446_v43 }
  0xee   :  { %v509_v35 = vrot.slane %v505_v14, 1  ;;  %v2492_v18 = vrot.slane %v1784_v31, 1  ;;  %v570_v0 = vrot.slane %v566_v62, 2  ;;  %v2116_v19 = vsel %vm1751_vm5, %v672_v45, 0.0 }
  0xef   :  { %v616_v60 = vadd.f32 %v2491_v61, %v586_v59  ;;  %v775_v10 = vsel %vm774_vm9, %v2025_v63, %v2027_v38  ;;  %v538_v40 = vadd.f32 %v534_v58, %v502_v33  ;;  %v545_v31 = vrot.slane %v541_v11, 2 }
  0xf0   :  { %v627_v3 = vadd.f32 %v2492_v18, %v591_v44  ;;  %v2121_v30 = vpop.permute.xlu1 %924  ;;  %v2123_v46 = vpop.permute.xlu0 %879  ;;  %v490_v23 = vadd.f32 %v488_v28, %v447_v22  ;;  %v2127_v59 = vsel %vm1793_vm6, %v673_v15, 0.0  ;;  %v2495_v43 = vrot.slane %v1759_v41, 2 }
  0xf1   :  { %v510_v14 = vrot.slane %v2100_v17, 1  ;;  %v546_v63 = vrot.slane %v2105_v39, 2  ;;  %v2496_v9 = vrot.slane %v1801_v6, 2  ;;  %v574_v33 = vadd.f32 %v570_v0, %v538_v40 }
  0xf2   :  { %v651_v4 = vadd.f32 %v2495_v43, %v615_v5  ;;  %v2137_v11 = vsel %vm1506_vm0, %v775_v10, 0.0  ;;  %v2498_v58 = vstv %s1708_s26  ;;  %v2500_v29 = vstv %s2493_s10 }
  0xf3   :  { %v652_v57 = vadd.f32 %v2496_v9, %v616_v60  ;;  %v686_v41 = vmul.f32 %v2498_v58, %v2116_v19  ;;  %v710_v62 = vmul.f32 %v2500_v29, %v2116_v19  ;;  %v2501_v8 = vrot.slane %v1819_v50, 2 }
  0xf4   :  { %v2502_v6 = vstv %s2494_s11  ;;  %v2503_v13 = vmov %v2498_v58  ;;  %v2504_v32 = vmov %v2500_v29  ;;  %v592_v1 = vadd.f32 %v1846_v52, %v574_v33  ;;  %v2157_v17 = vpop.permute.xlu1 %881  ;;  %v2159_v53 = vpop.permute.xlu0 %883 }
  0xf5   :  { %v663_v28 = vadd.f32 %v2501_v8, %v627_v3  ;;  %v746_v45 = vmul.f32 %v2502_v6, %v2116_v19  ;;  %v687_v5 = vmul.f32 %v2503_v13, %v2127_v59  ;;  %v711_v44 = vmul.f32 %v2504_v32, %v2127_v59 }
  0xf6   :  { %v688_v50 = vadd.f32 %v686_v41, %v651_v4  ;;  %v2506_v39 = vstv %s1735_s16  ;;  %v2507_v61 = vstv %s1745_s18  ;;  %v513_v22 = vadd.f32 %v509_v35, %v489_v25 }
  0xf7   :  { %v692_v15 = vmul.f32 %v2506_v39, %v2116_v19  ;;  %v722_v60 = vmul.f32 %v2507_v61, %v2116_v19  ;;  %v2508_v18 = vstv %s2497_s12  ;;  %v2509_v52 = vstv %s2499_s14 }
  0xf8   :  { %v789_v3 = vmul.f32 %v2508_v18, %v2137_v11  ;;  %v2173_v0 = vmul.f32 %v2509_v52, %v2137_v11  ;;  %v689_v10 = vadd.f32 %v687_v5, %v652_v57  ;;  %v2510_v40 = vrot.slane %v1829_v21, 1  ;;  %v2192_v13 = vpop.permute.xlu0 %968 }
  0xf9   :  { %v776_v4 = vsel %vm774_vm9, %v2027_v38, %v2047_v51  ;;  %v714_v9 = vrot.slane %v710_v62, 1  ;;  %v694_v25 = vadd.f32 %v692_v15, %v663_v28  ;;  %v549_v35 = vadd.f32 %v545_v31, %v513_v22 }
  0xfa   :  { %v628_v43 = vadd.f32 %v2510_v40, %v592_v1  ;;  %v2511_v33 = vstv %s2505_s15  ;;  %v715_v41 = vrot.slane %v711_v44, 1  ;;  %v2512_v29 = vmov %v2502_v6  ;;  %v2190_v6 = vpop.permute.xlu1 %966 }
  0xfb   :  { %v2183_v58 = vmul.f32 %v2511_v33, %v2137_v11  ;;  %v747_v57 = vmul.f32 %v2512_v29, %v2127_v59  ;;  %v2513_v21 = vrot.slane %v1834_v56, 2  ;;  %v718_v51 = vadd.f32 %v714_v9, %v688_v50 }
  0xfc   :  { %v726_v38 = vrot.slane %v722_v60, 1  ;;  %v2514_v62 = vstv %s1761_s1  ;;  %v579_v28 = vadd.f32 %v1865_v48, %v549_v35  ;;  %v2200_v5 = vsel %vm1517_vm2, %v776_v4, 0.0  ;;  %v2214_v40 = vpop.permute.xlu0 %989 }
  0xfd   :  { %v664_v8 = vadd.f32 %v2513_v21, %v628_v43  ;;  %v758_v31 = vmul.f32 %v2514_v62, %v2116_v19  ;;  %v719_v32 = vadd.f32 %v715_v41, %v689_v10  ;;  %v2515_v44 = vmov %v2506_v39 }
  0xfe   :  { %v693_v56 = vmul.f32 %v2515_v44, %v2127_v59  ;;  %v2516_v1 = vmov %v2507_v61  ;;  %v750_v15 = vrot.slane %v746_v45, 2  ;;  %v730_v50 = vadd.f32 %v726_v38, %v694_v25  ;;  %v2212_v10 = vpop.permute.xlu1 %970 }
  0xff   :  { %v723_v39 = vmul.f32 %v2516_v1, %v2127_v59  ;;  %v2517_v61 = vrot.slane %v1876_v47, 1  ;;  %v514_v22 = vadd.f32 %v510_v14, %v490_v23  ;;  %v817_v34 = vrot.slane %v2173_v0, 1 }
 0x100   :  { %v853_v48 = vrot.slane %v2183_v58, 2  ;;  %v751_v18 = vrot.slane %v747_v57, 2  ;;  %v695_v52 = vadd.f32 %v693_v56, %v664_v8  ;;  %v754_v45 = vadd.f32 %v750_v15, %v718_v51 }
 0x101   :  { %v603_v60 = vadd.f32 %v2517_v61, %v579_v28  ;;  %v762_v43 = vrot.slane %v758_v31, 2  ;;  %v2518_v47 = vrot.slane %v1883_v26, 2  ;;  %v550_v23 = vadd.f32 %v546_v63, %v514_v22 }
 0x102   :  { %v755_v14 = vadd.f32 %v751_v18, %v719_v32  ;;  %v2520_v0 = vstv %s2499_s14  ;;  %v727_v25 = vrot.slane %v723_v39, 1  ;;  %v2521_v35 = vmov %v2514_v62  ;;  %v2240_v28 = vpop.permute.xlu1 %991  ;;  %v2242_v32 = vpop.permute.xlu0 %993 }
 0x103   :  { %v639_v4 = vadd.f32 %v2518_v47, %v603_v60  ;;  %v814_v9 = vmul.f32 %v2520_v0, %v2200_v5  ;;  %v759_v33 = vmul.f32 %v2521_v35, %v2127_v59  ;;  %v766_v58 = vadd.f32 %v762_v43, %v730_v50 }
 0x104   :  { %v2522_v41 = vstv %s1811_s25  ;;  %v2523_v57 = vstv %s1821_s28  ;;  %v580_v26 = vadd.f32 %v1929_v24, %v550_v23  ;;  %v906_v63 = vsel %vm885_vm10, %v2049_v16, %v2065_v20 }
 0x105   :  { %v680_v29 = vmul.f32 %v2522_v41, %v2116_v19  ;;  %v698_v21 = vmul.f32 %v2523_v57, %v2116_v19  ;;  %v2524_v8 = vstv %s2497_s12  ;;  %v2525_v38 = vstv %s1773_s17 }
 0x106   :  { %v790_v51 = vmul.f32 %v2524_v8, %v2200_v5  ;;  %v795_v62 = vmul.f32 %v2525_v38, %v2137_v11  ;;  %v731_v31 = vadd.f32 %v727_v25, %v695_v52  ;;  %v791_v44 = vadd.f32 %v789_v3, %v754_v45  ;;  %v1071_v25 = vpop.permute.xlu1 %1070  ;;  %v1073_v35 = vpop.permute.xlu0 %1072 }
 0x107   :  { %v2527_v24 = vstv %s2519_s19  ;;  %v682_v1 = vadd.f32 %v680_v29, %v639_v4  ;;  %v2528_v16 = vrot.slane %v1897_v36, 1  ;;  %v818_v50 = vrot.slane %v814_v9, 1 }
 0x108   :  { %v825_v56 = vmul.f32 %v2527_v24, %v2137_v11  ;;  %v792_v15 = vadd.f32 %v790_v51, %v755_v14  ;;  %v2530_v61 = vstv %s2505_s15  ;;  %v763_v22 = vrot.slane %v759_v33, 2 }
 0x109   :  { %v604_v39 = vadd.f32 %v2528_v16, %v580_v26  ;;  %v850_v60 = vmul.f32 %v2530_v61, %v2200_v5  ;;  %v797_v18 = vadd.f32 %v795_v62, %v766_v58  ;;  %v702_v3 = vrot.slane %v698_v21, 1 }
 0x10a   :  { %v2531_v52 = vstv %s2526_s20  ;;  %v2532_v43 = vrot.slane %v1900_v2, 2  ;;  %v907_v36 = vsel %vm885_vm10, %v2065_v20, %v2067_v54  ;;  %v767_v4 = vadd.f32 %v763_v22, %v731_v31  ;;  %v1075_v16 = vpop.permute.xlu1 %1074 }
 0x10b   :  { %v734_v45 = vmul.f32 %v2531_v52, %v2116_v19  ;;  %v2533_v23 = vmov %v2522_v41  ;;  %v2534_v0 = vmov %v2523_v57  ;;  %v821_v33 = vadd.f32 %v817_v34, %v791_v44 }
 0x10c   :  { %v640_v47 = vadd.f32 %v2532_v43, %v604_v39  ;;  %v681_v14 = vmul.f32 %v2533_v23, %v2127_v59  ;;  %v699_v9 = vmul.f32 %v2534_v0, %v2127_v59  ;;  %v829_v19 = vrot.slane %v825_v56, 1  ;;  %v2284_v39 = vpop.permute.xlu0 %943 }
 0x10d   :  { %v2535_v2 = vstv %s2529_s22  ;;  %v706_v41 = vadd.f32 %v702_v3, %v682_v1  ;;  %v822_v29 = vadd.f32 %v818_v50, %v792_v15  ;;  %v2536_v20 = vmov %v2525_v38 }
 0x10e   :  { %v861_v58 = vmul.f32 %v2535_v2, %v2137_v11  ;;  %v796_v54 = vmul.f32 %v2536_v20, %v2200_v5  ;;  %v2537_v57 = vmov %v2527_v24  ;;  %v683_v26 = vadd.f32 %v681_v14, %v640_v47 }
 0x10f   :  { %v826_v21 = vmul.f32 %v2537_v57, %v2200_v5  ;;  %v854_v8 = vrot.slane %v850_v60, 2  ;;  %v833_v51 = vadd.f32 %v829_v19, %v797_v18  ;;  %v2538_v38 = vmov %v2535_v2  ;;  %v2302_v19 = vpop.permute.xlu1 %945 }
 0x110   :  { %v862_v34 = vmul.f32 %v2538_v38, %v2200_v5  ;;  %v738_v62 = vrot.slane %v734_v45, 2  ;;  %v926_v31 = vsel %vm885_vm10, %v2084_v12, %v2086_v42  ;;  %v798_v44 = vadd.f32 %v796_v54, %v767_v4  ;;  %v2304_v2 = vpop.permute.xlu0 %947 }
 0x111   :  { %v703_v24 = vrot.slane %v699_v9, 1  ;;  %v2539_v56 = vmov %v2531_v52  ;;  %v857_v15 = vadd.f32 %v853_v48, %v821_v33  ;;  %v865_v50 = vrot.slane %v861_v58, 2 }
 0x112   :  { %v735_v1 = vmul.f32 %v2539_v56, %v2127_v59  ;;  %v742_v61 = vadd.f32 %v738_v62, %v706_v41  ;;  %v2540_v60 = vstv %s1839_s0  ;;  %v858_v18 = vadd.f32 %v854_v8, %v822_v29 }
 0x113   :  { %v801_v22 = vmul.f32 %v2540_v60, %v2137_v11  ;;  %v830_v3 = vrot.slane %v826_v21, 1  ;;  %v2541_v12 = vstv %s1849_s29  ;;  %v707_v45 = vadd.f32 %v703_v24, %v683_v26  ;;  %v1036_v38 = vpop.permute.xlu1 %1035 }
 0x114   :  { %v837_v52 = vmul.f32 %v2541_v12, %v2137_v11  ;;  %v869_v43 = vadd.f32 %v865_v50, %v833_v51  ;;  %v866_v47 = vrot.slane %v862_v34, 2  ;;  %v927_v59 = vsel %vm885_vm10, %v2086_v42, %v2121_v30  ;;  %v1038_v34 = vpop.permute.xlu0 %1037 }
 0x115   :  { %v2542_v48 = vstv %s1837_s30  ;;  %v834_v23 = vadd.f32 %v830_v3, %v798_v44  ;;  %v739_v14 = vrot.slane %v735_v1, 2  ;;  %v2543_v0 = vmov %v2540_v60 }
 0x116   :  { %v783_v4 = vmul.f32 %v2542_v48, %v2137_v11  ;;  %v802_v9 = vmul.f32 %v2543_v0, %v2200_v5  ;;  %v1077_v33 = vsel %vm1076_vm11, %v1071_v25, %v1073_v35  ;;  %v910_v58 = vadd.f32 %v906_v63, %v857_v15 }
 0x117   :  { %v805_v29 = vrot.slane %v801_v22, 1  ;;  %v886_v42 = vsel %vm885_vm10, %v2123_v46, %v2157_v17  ;;  %v911_v30 = vadd.f32 %v907_v36, %v858_v18  ;;  %v841_v11 = vrot.slane %v837_v52, 2  ;;  %v1040_v22 = vpop.permute.xlu1 %1039 }
 0x118   :  { %v785_v41 = vadd.f32 %v783_v4, %v742_v61  ;;  %v743_v20 = vadd.f32 %v739_v14, %v707_v45  ;;  %v2544_v54 = vmov %v2541_v12  ;;  %v930_v21 = vadd.f32 %v926_v31, %v869_v43  ;;  %v1059_v18 = vpop.permute.xlu0 %1058 }
 0x119   :  { %v838_v57 = vmul.f32 %v2544_v54, %v2200_v5  ;;  %v2545_v25 = vmov %v2542_v48  ;;  %v972_v63 = vsel %vm885_vm10, %v2190_v6, %v2192_v13  ;;  %v2320_v8 = vsel %vm1751_vm5, %v1077_v33, 0.0 }
 0x11a   :  { %v784_v26 = vmul.f32 %v2545_v25, %v2200_v5  ;;  %v870_v46 = vadd.f32 %v866_v47, %v834_v23  ;;  %v806_v36 = vrot.slane %v802_v9, 1  ;;  %v2325_v51 = vsel %vm885_vm10, %v2157_v17, %v2159_v53 }
 0x11b   :  { %v973_v5 = vsel %vm885_vm10, %v2192_v13, %v2212_v10  ;;  %v809_v6 = vadd.f32 %v805_v29, %v785_v41  ;;  %v995_v27 = vsel %vm885_vm10, %v2214_v40, %v2240_v28  ;;  %v1078_v62 = vsel %vm1076_vm11, %v1073_v35, %v1075_v16 }
 0x11c   :  { %v1041_v31 = vsel %vm885_vm10, %v1036_v38, %v1038_v34  ;;  %v786_v44 = vadd.f32 %v784_v26, %v743_v20  ;;  %v842_v24 = vrot.slane %v838_v57, 2  ;;  %v976_v17 = vadd.f32 %v972_v63, %v910_v58  ;;  %v1061_v20 = vpop.permute.xlu1 %1060  ;;  %v1063_v54 = vpop.permute.xlu0 %1062 }
 0x11d   :  { %v2546_v53 = vstv %s1888_s13  ;;  %v977_v13 = vadd.f32 %v973_v5, %v911_v30  ;;  %v996_v10 = vsel %vm885_vm10, %v2240_v28, %v2242_v32  ;;  %v2547_v1 = vstv %s1902_s2 }
 0x11e   :  { %v1115_v56 = vmul.f32 %v2546_v53, %v2320_v8  ;;  %v1151_v40 = vmul.f32 %v2547_v1, %v2320_v8  ;;  %v2548_v35 = vstv %s1922_s27  ;;  %v931_v15 = vadd.f32 %v927_v59, %v870_v46 }
 0x11f   :  { %v1127_v16 = vmul.f32 %v2548_v35, %v2320_v8  ;;  %v999_v50 = vadd.f32 %v995_v27, %v930_v21  ;;  %v2349_v61 = vsel %vm1793_vm6, %v1078_v62, 0.0  ;;  %v1045_v60 = vadd.f32 %v1041_v31, %v976_v17 }
 0x120   :  { %v845_v28 = vadd.f32 %v841_v11, %v809_v6  ;;  %v2549_v32 = vstv %s1886_s3  ;;  %v1042_v12 = vsel %vm885_vm10, %v1038_v34, %v1040_v22  ;;  %v2550_v52 = vstv %s1924_s21  ;;  %v1013_v17 = vpop.permute.xlu1 %1012 }
 0x121   :  { %v1091_v3 = vmul.f32 %v2549_v32, %v2320_v8  ;;  %v1163_v45 = vmul.f32 %v2550_v52, %v2320_v8  ;;  %v810_v43 = vadd.f32 %v806_v36, %v786_v44  ;;  %v1000_v47 = vadd.f32 %v996_v10, %v931_v15 }
 0x122   :  { %v1119_v59 = vrot.slane %v1115_v56, 1  ;;  %v1097_v48 = vmul.f32 %v2551_v37, %v2320_v8  ;;  %v890_v4 = vadd.f32 %v886_v42, %v845_v28  ;;  %v1155_v23 = vrot.slane %v1151_v40, 2 }
 0x123   :  { %v2552_v14 = vmov %v2546_v53  ;;  %v1131_v9 = vrot.slane %v1127_v16, 1  ;;  %v1093_v33 = vadd.f32 %v1091_v3, %v1045_v60  ;;  %v1046_v58 = vadd.f32 %v1042_v12, %v977_v13  ;;  %v1015_v53 = vpop.permute.xlu0 %1014 }
 0x124   :  { %v1116_v0 = vmul.f32 %v2552_v14, %v2349_v61  ;;  %v2553_v41 = vmov %v2549_v32  ;;  %v2554_v30 = vmov %v2547_v1  ;;  %v949_v42 = vsel %vm885_vm10, %v2284_v39, %v2302_v19 }
 0x125   :  { %v1092_v29 = vmul.f32 %v2553_v41, %v2349_v61  ;;  %v1152_v11 = vmul.f32 %v2554_v30, %v2349_v61  ;;  %v1064_v57 = vsel %vm885_vm10, %v1059_v18, %v1061_v20  ;;  %v1167_v21 = vrot.slane %v1163_v45, 2 }
 0x126   :  { %v1065_v25 = vsel %vm885_vm10, %v1061_v20, %v1063_v54  ;;  %v846_v26 = vadd.f32 %v842_v24, %v810_v43  ;;  %v1068_v63 = vadd.f32 %v1064_v57, %v999_v50  ;;  %v2555_v46 = vmov %v2551_v37 }
 0x127   :  { %v1098_v36 = vmul.f32 %v2555_v46, %v2349_v61  ;;  %v1069_v5 = vadd.f32 %v1065_v25, %v1000_v47  ;;  %v950_v38 = vsel %vm885_vm10, %v2302_v19, %v2304_v2  ;;  %v1120_v34 = vrot.slane %v1116_v0, 1 }
 0x128   :  { %v2556_v39 = vmov %v2548_v35  ;;  %v1103_v27 = vmul.f32 %v1102_v55, %v2320_v8  ;;  %v953_v62 = vadd.f32 %v949_v42, %v890_v4  ;;  %v1123_v31 = vadd.f32 %v1119_v59, %v1093_v33 }
 0x129   :  { %v1128_v6 = vmul.f32 %v2556_v39, %v2349_v61  ;;  %v1094_v44 = vadd.f32 %v1092_v29, %v1046_v58  ;;  %v1099_v24 = vadd.f32 %v1097_v48, %v1068_v63  ;;  %v1156_v56 = vrot.slane %v1152_v11, 2 }
 0x12a   :  { %v1100_v13 = vadd.f32 %v1098_v36, %v1069_v5  ;;  %v1085_v19 = vmul.f32 %v1084_v7, %v2320_v8  ;;  %v1018_v2 = vsel %vm885_vm10, %v1013_v17, %v1015_v53  ;;  %v891_v10 = vadd.f32 %v2325_v51, %v846_v26  ;;  %v1017_v51 = vpop.permute.xlu1 %1016 }
 0x12b   :  { %v1135_v1 = vadd.f32 %v1131_v9, %v1099_v24  ;;  %v1139_v40 = vmul.f32 %v1138_v49, %v2320_v8  ;;  %v1022_v35 = vadd.f32 %v1018_v2, %v953_v62  ;;  %v1132_v16 = vrot.slane %v1128_v6, 1 }
 0x12c   :  { %v2557_v15 = vmov %v2550_v52  ;;  %v1107_v60 = vrot.slane %v1103_v27, 1  ;;  %v1104_v22 = vmul.f32 %v1102_v55, %v2349_v61  ;;  %v954_v18 = vadd.f32 %v950_v38, %v891_v10 }
 0x12d   :  { %v1164_v50 = vmul.f32 %v2557_v15, %v2349_v61  ;;  %v1159_v28 = vadd.f32 %v1155_v23, %v1123_v31  ;;  %v1124_v32 = vadd.f32 %v1120_v34, %v1094_v44  ;;  %v1087_v3 = vadd.f32 %v1085_v19, %v1022_v35 }
 0x12e   :  { %v1171_v12 = vadd.f32 %v1167_v21, %v1135_v1  ;;  %v1136_v52 = vadd.f32 %v1132_v16, %v1100_v13  ;;  %v1019_v45 = vsel %vm885_vm10, %v1015_v53, %v1017_v51  ;;  %v1086_v8 = vmul.f32 %v1084_v7, %v2349_v61 }
 0x12f   :  { %v1143_v43 = vrot.slane %v1139_v40, 2  ;;  %v1111_v47 = vadd.f32 %v1107_v60, %v1087_v3  ;;  %v1023_v59 = vadd.f32 %v1019_v45, %v954_v18  ;;  %v1140_v37 = vmul.f32 %v1138_v49, %v2349_v61 }
 0x130   :  { %v1168_v48 = vrot.slane %v1164_v50, 2  ;;  %v1108_v55 = vrot.slane %v1104_v22, 1  ;;  %v1175_v4 = vrot.slane %v1159_v28, 7  ;;  %v1160_v23 = vadd.f32 %v1156_v56, %v1124_v32 }
 0x131   :  { %v1147_v14 = vadd.f32 %v1143_v43, %v1111_v47  ;;  %v1088_v0 = vadd.f32 %v1086_v8, %v1023_v59  ;;  %v1181_v9 = vrot.slane %v1171_v12, 6  ;;  %v1144_v41 = vrot.slane %v1140_v37, 2 }
 0x132   :  { %v1172_v33 = vadd.f32 %v1168_v48, %v1136_v52  ;;  %vm1197_vm0 = vcmask 1044480   ;;  %v1176_v49 = vrot.slane %v1160_v23, 7 }
 0x133   :  { %v1186_v7 = vsel %vm1185_vm12, %v1147_v14, %v1175_v4  ;;  %v1112_v58 = vadd.f32 %v1108_v55, %v1088_v0 }
 0x134   :  { %v1189_v29 = vsel %vm1188_vm13, %v1186_v7, %v1181_v9  ;;  %v1182_v11 = vrot.slane %v1172_v33, 6 }
 0x135   :  { %v1192_v61 = vsel %vm1191_vm14, %v1189_v29, %v1147_v14  ;;  %v1148_v30 = vadd.f32 %v1144_v41, %v1112_v58 }
 0x136   :  { %v1195_v20 = vsel %vm1194_vm15, %v1192_v61, %v1175_v4 }
 0x137   :  { %v1198_v54 = vsel %vm1197_vm0, %v1195_v20, %v1181_v9  ;;  %v1187_v42 = vsel %vm1185_vm12, %v1148_v30, %v1176_v49 }
 0x138   :  { %v1200_v57 = vmax.f32 %v1198_v54, nan  ;;  %v1190_v21 = vsel %vm1188_vm13, %v1187_v42, %v1182_v11 }
 0x139   :  { %v1193_v25 = vsel %vm1191_vm14, %v1190_v21, %v1148_v30 }
 0x13a   :  { %v1202_v26 = vmin.f32 %v1200_v57, 0.734375  ;;  %v1196_v63 = vsel %vm1194_vm15, %v1193_v25, %v1176_v49 }
 0x13b   :  { %v1199_v46 = vsel %vm1197_vm0, %v1196_v63, %v1182_v11 }
 0x13c   :  { %1204 = vst [vmem:[%s2558_s23] sm:$0x3f] %v1202_v26  ;;  %v1201_v36 = vmax.f32 %v1199_v46, nan }
 0x13e   :  { %v1203_v5 = vmin.f32 %v1201_v36, 0.734375 }
 0x140   :  { %1205 = vst [vmem:[%s2558_s23 + $0x8] sm:$0x3f] %v1203_v5 }
 0x141   :  { %1210 = vsyncpa [#allocation3], 1 }
 0x142   :  { %1211 = vsyncpa [#allocation5], 1 }

</bundles_post_ra>
